<compile_context>
chip_gen: v5e
topology: v5e:2x2
jax: 0.10.0
libtpu: 0.0.40
codegen_flags: <defaults>
</compile_context>

<pallas_src>
import functools

import jax
import jax.numpy as jnp
import numpy as np
from jax.experimental import pallas as pl
from jax.experimental.pallas import tpu as pltpu

LRELU_SLOPE = 0.01  # F.leaky_relu default negative_slope (the spec uses the default)
# TODO(synk): canonical HiFiGAN checkpoints use slope 0.1; keep 0.01 to match the module.


def _leaky_relu(v):
    return jnp.where(v > 0, v, LRELU_SLOPE * v)


def _round_up(v, m):
    return -(-v // m) * m


# ----------------------------------------------------------------------------
# Fused ResBlock kernel.  For one (batch, time-tile) grid step it runs ALL
# stages   x <- x + conv2_d1(lrelu(conv1_d(lrelu(x))))   on a haloed window of
# the input that stays resident in VMEM, then stores the final tile once.
#
#   win : f32 scratch holding the current x window; column j <-> global time
#         position (t0 - H + j).  Each stage consumes (h1 + h2) halo columns
#         per side, so after the last stage the valid region is exactly the
#         output tile [t0, t0 + Tt).
#   act : scratch (input dtype) holding conv inputs (lrelu + zero padding);
#         per-tap operands are read from it with static slices.
# ----------------------------------------------------------------------------
def _resblock_kernel(*refs, dilations, K, Tt, T, H, HB, has_halo, fold_taps,
                     act_dtype):
    if has_halo:
        (xl_ref, xc_ref, xr_ref, w1_ref, b1_ref, w2_ref, b2_ref,
         o_ref, win, act) = refs
    else:
        (xc_ref, w1_ref, b1_ref, w2_ref, b2_ref, o_ref, win, act) = refs

    C = xc_ref.shape[1]
    t0 = pl.program_id(1) * Tt
    # Only tiles whose haloed window touches the sequence boundary need the
    # zero-padding masks (pl.when-gated below).
    is_edge = jnp.logical_or(t0 < H, t0 + Tt + H > T)

    # ---- assemble the haloed x window (only H extra columns per side) ----
    win[:, H:H + Tt] = xc_ref[0].astype(jnp.float32)
    if H > 0:
        if has_halo:
            win[:, 0:H] = xl_ref[0][:, HB - H:].astype(jnp.float32)
            win[:, H + Tt:H + Tt + H] = xr_ref[0][:, 0:H].astype(jnp.float32)
        else:
            zeros = jnp.zeros((C, H), jnp.float32)
            win[:, 0:H] = zeros
            win[:, H + Tt:H + Tt + H] = zeros

    def mask_edge(start, width):
        # Zero conv inputs lying outside the real sequence [0, T) -- edge tiles only.
        @pl.when(is_edge)
        def _():
            g = (t0 - H + start) + jax.lax.broadcasted_iota(
                jnp.int32, (1, width), 1)
            v = act[:, start:start + width]
            act[:, start:start + width] = jnp.where((g >= 0) & (g < T), v, 0)

    def conv(w_ref, b_ref, s, start, d, w_out):
        # 'same' dilated conv over act[:, start : start + w_out + 2*h1],
        # producing w_out columns.  Weights are packed (C_out, K*C_in).
        ws = w_ref[s]
        if fold_taps:
            stacked = jnp.concatenate(
                [act[:, start + k * d:start + k * d + w_out] for k in range(K)],
                axis=0)
            out = jnp.dot(ws, stacked, preferred_element_type=jnp.float32)
        else:
            out = jnp.dot(ws[:, 0:C], act[:, start:start + w_out],
                          preferred_element_type=jnp.float32)
            for k in range(1, K):
                out = out + jnp.dot(ws[:, k * C:(k + 1) * C],
                                    act[:, start + k * d:start + k * d + w_out],
                                    preferred_element_type=jnp.float32)
        return out + b_ref[s]

    c, W = 0, Tt + 2 * H
    for s, d in enumerate(dilations):
        h1 = (K - 1) * d // 2
        h2 = (K - 1) // 2
        Wm = W - 2 * h1                      # conv1 output width
        Wn = Wm - 2 * h2                     # conv2 output width

        # conv1 input: leaky_relu(x), zero padded outside [0, T)
        act[:, c:c + W] = _leaky_relu(win[:, c:c + W]).astype(act_dtype)
        mask_edge(c, W)
        xt = conv(w1_ref, b1_ref, s, c, d, Wm)            # dilation d

        # conv2 input: leaky_relu(x_tmp), zero padded outside [0, T)
        c1 = c + h1
        act[:, c1:c1 + Wm] = _leaky_relu(xt).astype(act_dtype)
        mask_edge(c1, Wm)
        y = conv(w2_ref, b2_ref, s, c1, 1, Wn)            # dilation 1

        # residual add, in place on the shrunken window
        c2 = c1 + h2
        win[:, c2:c2 + Wn] = win[:, c2:c2 + Wn] + y
        c, W = c2, Wn

    # After the last stage c == H and W == Tt: one lane-dense block store.
    o_ref[0] = win[:, H:H + Tt].astype(o_ref.dtype)


def _choose_t_tile(N, C, T, itemsize):
    """Pick a lane-dense time tile from a conservative VMEM budget."""
    # Rough per-column VMEM bytes: double-buffered in/out blocks (input dtype),
    # the win/act scratch windows, and a few full-width f32 temporaries.
    per_col = C * (5 * itemsize + 48)
    fit = max(128, min(2048, (24 * 1024 * 1024 // per_col) // 128 * 128))
    if T <= 256 or (N >= 2 and T <= fit):
        return int(T)                          # single tile: no halo machinery
    tt = fit
    if N == 1:
        # keep >= 2 time tiles so both v7x TensorCores get work
        tt = min(tt, max(128, _round_up(-(-T // 2), 128)))
    return int(tt)


def resblock_forward_pallas(x, first, second, dilations, *, t_tile=None):
    """y = ResBlock(x): all (conv->lrelu->conv->+x) stages fused in one pallas_call."""
    N, C, T = x.shape
    K = first[0][0].shape[-1]
    assert K % 2 == 1, "odd kernel size required for symmetric 'same' padding"
    S = len(dilations)
    assert len(first) == S and len(second) == S

    H = sum((K - 1) * d // 2 + (K - 1) // 2 for d in dilations)  # halo per side
    itemsize = x.dtype.itemsize
    if t_tile is None:
        t_tile = _choose_t_tile(N, C, T, itemsize)

    if t_tile >= T:
        # -------- single-tile path: no halo inputs, no padding --------
        t_tile, num_t, T_pad, has_halo, HB = T, 1, T, False, 0
        xp = x
    else:
        HB = max(128, _round_up(H, 128))       # narrow halo block width
        t_tile = max(_round_up(t_tile, HB), HB)
        assert t_tile % 128 == 0, "time tile must be lane-dense (multiple of 128)"
        T_pad = _round_up(T, t_tile)
        num_t = T_pad // t_tile
        has_halo = True
        xp = x if T_pad == T else jnp.pad(x, ((0, 0), (0, 0), (0, T_pad - T)))

    # Weights: (C_out, C_in, K) -> (C_out, K*C_in); with the K taps folded into
    # the contraction each conv is ONE MXU matmul (used when C % 8 == 0).
    def pack(convs):
        w2d = [jnp.transpose(w, (0, 2, 1)).reshape(C, K * C) for (w, _) in convs]
        bs = [b.reshape(C, 1) for (_, b) in convs]
        return jnp.stack(w2d).astype(x.dtype), jnp.stack(bs).astype(jnp.float32)

    w1_all, b1_all = pack(first)
    w2_all, b2_all = pack(second)
    fold_taps = (C % 8 == 0)

    Wpad = _round_up(t_tile + 2 * H, 128)      # lane-padded scratch width
    kernel = functools.partial(
        _resblock_kernel, dilations=tuple(dilations), K=K, Tt=t_tile, T=T,
        H=H, HB=HB, has_halo=has_halo, fold_taps=fold_taps, act_dtype=x.dtype)

    x_c_spec = pl.BlockSpec((1, C, t_tile), lambda n, t: (n, 0, t))
    w_spec = pl.BlockSpec((S, C, K * C), lambda n, t: (0, 0, 0))
    b_spec = pl.BlockSpec((S, C, 1), lambda n, t: (0, 0, 0))
    # TODO(synk): weights/biases have constant index_maps; single-buffering them
    # (pipeline_mode=pl.Buffered(1)) would save 2*S*K*C*C*itemsize VMEM at large C.

    if has_halo:
        nb = t_tile // HB
        num_hb = T_pad // HB
        x_l_spec = pl.BlockSpec(
            (1, C, HB), lambda n, t: (n, 0, jnp.maximum(t * nb - 1, 0)))
        x_r_spec = pl.BlockSpec(
            (1, C, HB), lambda n, t: (n, 0, jnp.minimum((t + 1) * nb, num_hb - 1)))
        in_specs = [x_l_spec, x_c_spec, x_r_spec, w_spec, b_spec, w_spec, b_spec]
        operands = (xp, xp, xp, w1_all, b1_all, w2_all, b2_all)
    else:
        in_specs = [x_c_spec, w_spec, b_spec, w_spec, b_spec]
        operands = (xp, w1_all, b1_all, w2_all, b2_all)

    # Conservative VMEM sizing (double-buffered io + resident weights + scratch
    # + temporaries), used for the explicit scoped-VMEM limit.
    est = (4 * C * (t_tile + max(HB, 1)) * itemsize
           + 2 * (w1_all.nbytes + b1_all.nbytes + w2_all.nbytes + b2_all.nbytes)
           + (4 + itemsize) * C * Wpad
           + 4 * C * (t_tile + 2 * H) * (2 * K + 4))
    vmem_limit = int(min(max(est, 32 * 1024 * 1024), 64 * 1024 * 1024))

    out = pl.pallas_call(
        kernel,
        out_shape=jax.ShapeDtypeStruct((N, C, T_pad), x.dtype),
        grid=(N, num_t),
        in_specs=in_specs,
        out_specs=pl.BlockSpec((1, C, t_tile), lambda n, t: (n, 0, t)),
        scratch_shapes=[pltpu.VMEM((C, Wpad), jnp.float32),   # win: x / residual
                        pltpu.VMEM((C, Wpad), x.dtype)],      # act: conv inputs
        compiler_params=pltpu.CompilerParams(
            dimension_semantics=("parallel", "parallel"),
            vmem_limit_bytes=vmem_limit),
    )(*operands)

    return out if T_pad == T else out[:, :, :T]


# ----------------------------------------------------------------------------
# Parameter construction (weight_norm: w = g * v / ||v||, norm over (in, k))
# ----------------------------------------------------------------------------
def make_wn_conv_params(key, channels, kernel):
    k1, k2, k3 = jax.random.split(key, 3)
    v = jax.random.normal(k1, (channels, channels, kernel), jnp.float32) * 0.1
    g = 1.0 + 0.5 * jax.random.normal(k2, (channels, 1, 1), jnp.float32)
    b = jax.random.normal(k3, (channels,), jnp.float32) * 0.1
    norm = jnp.sqrt(jnp.sum(v * v, axis=(1, 2), keepdims=True))
    w = g * v / norm
    return w, b


def make_resblock_params(key, channels, kernel, dilations):
    keys = jax.random.split(key, 2 * len(dilations))
    first = [make_wn_conv_params(keys[i], channels, kernel)
             for i in range(len(dilations))]
    second = [make_wn_conv_params(keys[len(dilations) + i], channels, kernel)
              for i in range(len(dilations))]
    return first, second


# ----------------------------------------------------------------------------
# Pure-JAX reference
# ----------------------------------------------------------------------------
def _ref_conv1d(x, w, b, dilation):
    pad = (w.shape[2] - 1) * dilation // 2
    y = jax.lax.conv_general_dilated(
        x, w, window_strides=(1,), padding=[(pad, pad)],
        rhs_dilation=(dilation,), dimension_numbers=("NCH", "OIH", "NCH"))
    return y + b[None, :, None]


def resblock_forward_ref(x, first, second, dilations):
    for (w1, b1), (w2, b2), d in zip(first, second, dilations):
        x_tmp = _ref_conv1d(_leaky_relu(x), w1, b1, d)
        x_tmp = _ref_conv1d(_leaky_relu(x_tmp), w2, b2, 1)
        x = x + x_tmp
    return x


if __name__ == "__main__":
    kernel_size = 3
    dilations = (1, 3, 5)

    key = jax.random.PRNGKey(0)
    kx, kp, kx2, kp2 = jax.random.split(key, 4)

    # --- module-sized small case (single-tile path, per-tap dots since C%8!=0) ---
    batch, channels, seq = 2, 4, 16
    x = jax.random.normal(kx, (batch, channels, seq), jnp.float32)
    first, second = make_resblock_params(kp, channels, kernel_size, dilations)
    y = jax.block_until_ready(
        resblock_forward_pallas(x, first, second, dilations))
    y_ref = resblock_forward_ref(x, first, second, dilations)
    np.testing.assert_allclose(np.asarray(y), np.asarray(y_ref),
                               rtol=1e-4, atol=1e-4)

    # --- multi-tile case: narrow-halo fetch, pl.when edge masking, folded taps,
    #     T % t_tile != 0 padding, and >=2 time tiles with batch == 1 ---
    x2 = jax.random.normal(kx2, (1, 8, 300), jnp.float32)
    first2, second2 = make_resblock_params(kp2, 8, kernel_size, dilations)
    y2 = jax.block_until_ready(
        resblock_forward_pallas(x2, first2, second2, dilations, t_tile=128))
    y2_ref = resblock_forward_ref(x2, first2, second2, dilations)
    np.testing.assert_allclose(np.asarray(y2), np.asarray(y2_ref),
                               rtol=1e-4, atol=1e-4)

    print("KERNEL_OK")
</pallas_src>

<mosaic_0001>
module attributes {stable_mosaic.version = 11 : i64} {
  func.func @_resblock_kernel(%arg0: i32, %arg1: i32, %arg2: memref<1x4x16xf32, #tpu.memory_space<vmem>>, %arg3: memref<3x4x12xf32, #tpu.memory_space<vmem>>, %arg4: memref<3x4x1xf32, #tpu.memory_space<vmem>>, %arg5: memref<3x4x12xf32, #tpu.memory_space<vmem>>, %arg6: memref<3x4x1xf32, #tpu.memory_space<vmem>>, %arg7: memref<1x4x16xf32, #tpu.memory_space<vmem>>, %arg8: memref<4x128xf32, #tpu.memory_space<vmem>>, %arg9: memref<4x128xf32, #tpu.memory_space<vmem>>) attributes {dimension_semantics = [#tpu.dimension_semantics<parallel>, #tpu.dimension_semantics<parallel>], iteration_bounds = array<i64: 2, 1>, scalar_prefetch = 0 : i64, scratch_operands = 2 : i64, tpu.core_type = #tpu.core_type<tc>, window_params = [{transform_indices = @transform_0, window_bounds = array<i64: 1, 4, 16>}, {pipeline_mode = #tpu.pipeline_mode<synchronous>, transform_indices = @transform_1, window_bounds = array<i64: 3, 4, 12>}, {pipeline_mode = #tpu.pipeline_mode<synchronous>, transform_indices = @transform_2, window_bounds = array<i64: 3, 4, 1>}, {pipeline_mode = #tpu.pipeline_mode<synchronous>, transform_indices = @transform_3, window_bounds = array<i64: 3, 4, 12>}, {pipeline_mode = #tpu.pipeline_mode<synchronous>, transform_indices = @transform_4, window_bounds = array<i64: 3, 4, 1>}, {transform_indices = @transform_5, window_bounds = array<i64: 1, 4, 16>}]} {
    %c16_i32 = arith.constant 16 : i32
    %0 = arith.muli %arg1, %c16_i32 : i32
    %c12_i32 = arith.constant 12 : i32
    %1 = arith.cmpi slt, %0, %c12_i32 : i32
    %c16_i32_0 = arith.constant 16 : i32
    %2 = arith.addi %0, %c16_i32_0 : i32
    %c12_i32_1 = arith.constant 12 : i32
    %3 = arith.addi %2, %c12_i32_1 : i32
    %c16_i32_2 = arith.constant 16 : i32
    %4 = arith.cmpi sgt, %3, %c16_i32_2 : i32
    %5 = arith.ori %1, %4 : i1
    %c0 = arith.constant 0 : index
    %c0_3 = arith.constant 0 : index
    %c0_4 = arith.constant 0 : index
    %6 = vector.load %arg2[%c0, %c0_3, %c0_4] : memref<1x4x16xf32, #tpu.memory_space<vmem>>, vector<1x4x16xf32>
    %7 = vector.shape_cast %6 : vector<1x4x16xf32> to vector<4x16xf32>
    %c0_5 = arith.constant 0 : index
    %c12 = arith.constant 12 : index
    %8 = vector.load %arg8[%c0_5, %c12] : memref<4x128xf32, #tpu.memory_space<vmem>>, vector<4x16xf32>
    tpu.vector_store %arg8[%c0_5, %c12], %7 {strides = array<i32>} : memref<4x128xf32, #tpu.memory_space<vmem>>, vector<4x16xf32>,
    %cst = arith.constant 0.000000e+00 : f32
    %9 = vector.broadcast %cst : f32 to vector<4x12xf32>
    %c0_6 = arith.constant 0 : index
    %c0_7 = arith.constant 0 : index
    %10 = vector.load %arg8[%c0_6, %c0_7] : memref<4x128xf32, #tpu.memory_space<vmem>>, vector<4x12xf32>
    tpu.vector_store %arg8[%c0_6, %c0_7], %9 {strides = array<i32>} : memref<4x128xf32, #tpu.memory_space<vmem>>, vector<4x12xf32>,
    %c0_8 = arith.constant 0 : index
    %c28 = arith.constant 28 : index
    %11 = vector.load %arg8[%c0_8, %c28] : memref<4x128xf32, #tpu.memory_space<vmem>>, vector<4x12xf32>
    tpu.vector_store %arg8[%c0_8, %c28], %9 {strides = array<i32>} : memref<4x128xf32, #tpu.memory_space<vmem>>, vector<4x12xf32>,
    %c0_9 = arith.constant 0 : index
    %c0_10 = arith.constant 0 : index
    %12 = vector.load %arg8[%c0_9, %c0_10] : memref<4x128xf32, #tpu.memory_space<vmem>>, vector<4x40xf32>
    %cst_11 = arith.constant 0.000000e+00 : f32
    %13 = vector.broadcast %cst_11 : f32 to vector<4x40xf32>
    %14 = arith.cmpf ogt, %12, %13 : vector<4x40xf32>
    %cst_12 = arith.constant 0.00999999977 : f32
    %15 = vector.broadcast %cst_12 : f32 to vector<4x40xf32>
    %16 = arith.mulf %15, %12 : vector<4x40xf32>
    %17 = arith.select %14, %12, %16 : vector<4x40xi1>, vector<4x40xf32>
    %c0_13 = arith.constant 0 : index
    %c0_14 = arith.constant 0 : index
    %18 = vector.load %arg9[%c0_13, %c0_14] : memref<4x128xf32, #tpu.memory_space<vmem>>, vector<4x40xf32>
    tpu.vector_store %arg9[%c0_13, %c0_14], %17 {strides = array<i32>} : memref<4x128xf32, #tpu.memory_space<vmem>>, vector<4x40xf32>,
    %19 = arith.extui %5 : i1 to i32
    %c0_i32 = arith.constant 0 : i32
    %20 = arith.cmpi ne, %19, %c0_i32 : i32
    scf.if %20 {
      %c12_i32_141 = arith.constant 12 : i32
      %178 = arith.subi %0, %c12_i32_141 : i32
      %c0_i32_142 = arith.constant 0 : i32
      %179 = arith.addi %178, %c0_i32_142 : i32
      %180 = tpu.iota {dimensions = array<i32: 1>} : vector<1x40xi32>
      %181 = vector.broadcast %179 : i32 to vector<1x40xi32>
      %182 = arith.addi %181, %180 : vector<1x40xi32>
      %c0_143 = arith.constant 0 : index
      %c0_144 = arith.constant 0 : index
      %183 = vector.load %arg9[%c0_143, %c0_144] : memref<4x128xf32, #tpu.memory_space<vmem>>, vector<4x40xf32>
      %c0_i32_145 = arith.constant 0 : i32
      %184 = vector.broadcast %c0_i32_145 : i32 to vector<1x40xi32>
      %185 = arith.cmpi sge, %182, %184 : vector<1x40xi32>
      %c16_i32_146 = arith.constant 16 : i32
      %186 = vector.broadcast %c16_i32_146 : i32 to vector<1x40xi32>
      %187 = arith.cmpi slt, %182, %186 : vector<1x40xi32>
      %188 = arith.andi %185, %187 : vector<1x40xi1>
      %c0_i32_147 = arith.constant 0 : i32
      %189 = arith.sitofp %c0_i32_147 : i32 to f32
      %190 = vector.shape_cast %188 : vector<1x40xi1> to vector<1x40xi1>
      %191 = vector.broadcast %190 : vector<1x40xi1> to vector<4x40xi1>
      %192 = vector.broadcast %189 : f32 to vector<4x40xf32>
      %193 = arith.select %191, %183, %192 : vector<4x40xi1>, vector<4x40xf32>
      %c0_148 = arith.constant 0 : index
      %c0_149 = arith.constant 0 : index
      %194 = vector.load %arg9[%c0_148, %c0_149] : memref<4x128xf32, #tpu.memory_space<vmem>>, vector<4x40xf32>
      tpu.vector_store %arg9[%c0_148, %c0_149], %193 {strides = array<i32>} : memref<4x128xf32, #tpu.memory_space<vmem>>, vector<4x40xf32>,
    } else {
    }
    %c0_15 = arith.constant 0 : index
    %c0_16 = arith.constant 0 : index
    %c0_17 = arith.constant 0 : index
    %21 = vector.load %arg3[%c0_15, %c0_16, %c0_17] : memref<3x4x12xf32, #tpu.memory_space<vmem>>, vector<1x4x12xf32>
    %22 = vector.shape_cast %21 : vector<1x4x12xf32> to vector<4x12xf32>
    %23 = vector.extract_strided_slice %22 {offsets = [0, 0], sizes = [4, 4], strides = [1, 1]} : vector<4x12xf32> to vector<4x4xf32>
    %c0_18 = arith.constant 0 : index
    %c0_19 = arith.constant 0 : index
    %24 = vector.load %arg9[%c0_18, %c0_19] : memref<4x128xf32, #tpu.memory_space<vmem>>, vector<4x38xf32>
    %cst_20 = arith.constant dense<0.000000e+00> : vector<4x38xf32>
    %25 = tpu.matmul %23, %24, %cst_20 {dimension_numbers = #tpu.dot_dimension_numbers<[1], [0], [0], [1], [0, 0, 1, 1], [], []>} : vector<4x4xf32>, vector<4x38xf32>, vector<4x38xf32> -> vector<4x38xf32>
    %26 = vector.extract_strided_slice %22 {offsets = [0, 4], sizes = [4, 4], strides = [1, 1]} : vector<4x12xf32> to vector<4x4xf32>
    %c0_21 = arith.constant 0 : index
    %c1 = arith.constant 1 : index
    %27 = vector.load %arg9[%c0_21, %c1] : memref<4x128xf32, #tpu.memory_space<vmem>>, vector<4x38xf32>
    %cst_22 = arith.constant dense<0.000000e+00> : vector<4x38xf32>
    %28 = tpu.matmul %26, %27, %cst_22 {dimension_numbers = #tpu.dot_dimension_numbers<[1], [0], [0], [1], [0, 0, 1, 1], [], []>} : vector<4x4xf32>, vector<4x38xf32>, vector<4x38xf32> -> vector<4x38xf32>
    %29 = arith.addf %25, %28 : vector<4x38xf32>
    %30 = vector.extract_strided_slice %22 {offsets = [0, 8], sizes = [4, 4], strides = [1, 1]} : vector<4x12xf32> to vector<4x4xf32>
    %c0_23 = arith.constant 0 : index
    %c2 = arith.constant 2 : index
    %31 = vector.load %arg9[%c0_23, %c2] : memref<4x128xf32, #tpu.memory_space<vmem>>, vector<4x38xf32>
    %cst_24 = arith.constant dense<0.000000e+00> : vector<4x38xf32>
    %32 = tpu.matmul %30, %31, %cst_24 {dimension_numbers = #tpu.dot_dimension_numbers<[1], [0], [0], [1], [0, 0, 1, 1], [], []>} : vector<4x4xf32>, vector<4x38xf32>, vector<4x38xf32> -> vector<4x38xf32>
    %33 = arith.addf %29, %32 : vector<4x38xf32>
    %c0_25 = arith.constant 0 : index
    %c0_26 = arith.constant 0 : index
    %c0_27 = arith.constant 0 : index
    %34 = vector.load %arg4[%c0_25, %c0_26, %c0_27] : memref<3x4x1xf32, #tpu.memory_space<vmem>>, vector<1x4x1xf32>
    %35 = vector.shape_cast %34 : vector<1x4x1xf32> to vector<4x1xf32>
    %36 = vector.broadcast %35 : vector<4x1xf32> to vector<4x38xf32>
    %37 = arith.addf %33, %36 : vector<4x38xf32>
    %cst_28 = arith.constant 0.000000e+00 : f32
    %38 = vector.broadcast %cst_28 : f32 to vector<4x38xf32>
    %39 = arith.cmpf ogt, %37, %38 : vector<4x38xf32>
    %cst_29 = arith.constant 0.00999999977 : f32
    %40 = vector.broadcast %cst_29 : f32 to vector<4x38xf32>
    %41 = arith.mulf %40, %37 : vector<4x38xf32>
    %42 = arith.select %39, %37, %41 : vector<4x38xi1>, vector<4x38xf32>
    %c0_30 = arith.constant 0 : index
    %c1_31 = arith.constant 1 : index
    %43 = vector.load %arg9[%c0_30, %c1_31] : memref<4x128xf32, #tpu.memory_space<vmem>>, vector<4x38xf32>
    tpu.vector_store %arg9[%c0_30, %c1_31], %42 {strides = array<i32>} : memref<4x128xf32, #tpu.memory_space<vmem>>, vector<4x38xf32>,
    %44 = arith.extui %5 : i1 to i32
    %c0_i32_32 = arith.constant 0 : i32
    %45 = arith.cmpi ne, %44, %c0_i32_32 : i32
    scf.if %45 {
      %c12_i32_141 = arith.constant 12 : i32
      %178 = arith.subi %0, %c12_i32_141 : i32
      %c1_i32 = arith.constant 1 : i32
      %179 = arith.addi %178, %c1_i32 : i32
      %180 = tpu.iota {dimensions = array<i32: 1>} : vector<1x38xi32>
      %181 = vector.broadcast %179 : i32 to vector<1x38xi32>
      %182 = arith.addi %181, %180 : vector<1x38xi32>
      %c0_142 = arith.constant 0 : index
      %c1_143 = arith.constant 1 : index
      %183 = vector.load %arg9[%c0_142, %c1_143] : memref<4x128xf32, #tpu.memory_space<vmem>>, vector<4x38xf32>
      %c0_i32_144 = arith.constant 0 : i32
      %184 = vector.broadcast %c0_i32_144 : i32 to vector<1x38xi32>
      %185 = arith.cmpi sge, %182, %184 : vector<1x38xi32>
      %c16_i32_145 = arith.constant 16 : i32
      %186 = vector.broadcast %c16_i32_145 : i32 to vector<1x38xi32>
      %187 = arith.cmpi slt, %182, %186 : vector<1x38xi32>
      %188 = arith.andi %185, %187 : vector<1x38xi1>
      %c0_i32_146 = arith.constant 0 : i32
      %189 = arith.sitofp %c0_i32_146 : i32 to f32
      %190 = vector.shape_cast %188 : vector<1x38xi1> to vector<1x38xi1>
      %191 = vector.broadcast %190 : vector<1x38xi1> to vector<4x38xi1>
      %192 = vector.broadcast %189 : f32 to vector<4x38xf32>
      %193 = arith.select %191, %183, %192 : vector<4x38xi1>, vector<4x38xf32>
      %c0_147 = arith.constant 0 : index
      %c1_148 = arith.constant 1 : index
      %194 = vector.load %arg9[%c0_147, %c1_148] : memref<4x128xf32, #tpu.memory_space<vmem>>, vector<4x38xf32>
      tpu.vector_store %arg9[%c0_147, %c1_148], %193 {strides = array<i32>} : memref<4x128xf32, #tpu.memory_space<vmem>>, vector<4x38xf32>,
    } else {
    }
    %c0_33 = arith.constant 0 : index
    %c0_34 = arith.constant 0 : index
    %c0_35 = arith.constant 0 : index
    %46 = vector.load %arg5[%c0_33, %c0_34, %c0_35] : memref<3x4x12xf32, #tpu.memory_space<vmem>>, vector<1x4x12xf32>
    %47 = vector.shape_cast %46 : vector<1x4x12xf32> to vector<4x12xf32>
    %48 = vector.extract_strided_slice %47 {offsets = [0, 0], sizes = [4, 4], strides = [1, 1]} : vector<4x12xf32> to vector<4x4xf32>
    %c0_36 = arith.constant 0 : index
    %c1_37 = arith.constant 1 : index
    %49 = vector.load %arg9[%c0_36, %c1_37] : memref<4x128xf32, #tpu.memory_space<vmem>>, vector<4x36xf32>
    %cst_38 = arith.constant dense<0.000000e+00> : vector<4x36xf32>
    %50 = tpu.matmul %48, %49, %cst_38 {dimension_numbers = #tpu.dot_dimension_numbers<[1], [0], [0], [1], [0, 0, 1, 1], [], []>} : vector<4x4xf32>, vector<4x36xf32>, vector<4x36xf32> -> vector<4x36xf32>
    %51 = vector.extract_strided_slice %47 {offsets = [0, 4], sizes = [4, 4], strides = [1, 1]} : vector<4x12xf32> to vector<4x4xf32>
    %c0_39 = arith.constant 0 : index
    %c2_40 = arith.constant 2 : index
    %52 = vector.load %arg9[%c0_39, %c2_40] : memref<4x128xf32, #tpu.memory_space<vmem>>, vector<4x36xf32>
    %cst_41 = arith.constant dense<0.000000e+00> : vector<4x36xf32>
    %53 = tpu.matmul %51, %52, %cst_41 {dimension_numbers = #tpu.dot_dimension_numbers<[1], [0], [0], [1], [0, 0, 1, 1], [], []>} : vector<4x4xf32>, vector<4x36xf32>, vector<4x36xf32> -> vector<4x36xf32>
    %54 = arith.addf %50, %53 : vector<4x36xf32>
    %55 = vector.extract_strided_slice %47 {offsets = [0, 8], sizes = [4, 4], strides = [1, 1]} : vector<4x12xf32> to vector<4x4xf32>
    %c0_42 = arith.constant 0 : index
    %c3 = arith.constant 3 : index
    %56 = vector.load %arg9[%c0_42, %c3] : memref<4x128xf32, #tpu.memory_space<vmem>>, vector<4x36xf32>
    %cst_43 = arith.constant dense<0.000000e+00> : vector<4x36xf32>
    %57 = tpu.matmul %55, %56, %cst_43 {dimension_numbers = #tpu.dot_dimension_numbers<[1], [0], [0], [1], [0, 0, 1, 1], [], []>} : vector<4x4xf32>, vector<4x36xf32>, vector<4x36xf32> -> vector<4x36xf32>
    %58 = arith.addf %54, %57 : vector<4x36xf32>
    %c0_44 = arith.constant 0 : index
    %c0_45 = arith.constant 0 : index
    %c0_46 = arith.constant 0 : index
    %59 = vector.load %arg6[%c0_44, %c0_45, %c0_46] : memref<3x4x1xf32, #tpu.memory_space<vmem>>, vector<1x4x1xf32>
    %60 = vector.shape_cast %59 : vector<1x4x1xf32> to vector<4x1xf32>
    %61 = vector.broadcast %60 : vector<4x1xf32> to vector<4x36xf32>
    %62 = arith.addf %58, %61 : vector<4x36xf32>
    %c0_47 = arith.constant 0 : index
    %c2_48 = arith.constant 2 : index
    %63 = vector.load %arg8[%c0_47, %c2_48] : memref<4x128xf32, #tpu.memory_space<vmem>>, vector<4x36xf32>
    %64 = arith.addf %63, %62 : vector<4x36xf32>
    %c0_49 = arith.constant 0 : index
    %c2_50 = arith.constant 2 : index
    %65 = vector.load %arg8[%c0_49, %c2_50] : memref<4x128xf32, #tpu.memory_space<vmem>>, vector<4x36xf32>
    tpu.vector_store %arg8[%c0_49, %c2_50], %64 {strides = array<i32>} : memref<4x128xf32, #tpu.memory_space<vmem>>, vector<4x36xf32>,
    %c0_51 = arith.constant 0 : index
    %c2_52 = arith.constant 2 : index
    %66 = vector.load %arg8[%c0_51, %c2_52] : memref<4x128xf32, #tpu.memory_space<vmem>>, vector<4x36xf32>
    %cst_53 = arith.constant 0.000000e+00 : f32
    %67 = vector.broadcast %cst_53 : f32 to vector<4x36xf32>
    %68 = arith.cmpf ogt, %66, %67 : vector<4x36xf32>
    %cst_54 = arith.constant 0.00999999977 : f32
    %69 = vector.broadcast %cst_54 : f32 to vector<4x36xf32>
    %70 = arith.mulf %69, %66 : vector<4x36xf32>
    %71 = arith.select %68, %66, %70 : vector<4x36xi1>, vector<4x36xf32>
    %c0_55 = arith.constant 0 : index
    %c2_56 = arith.constant 2 : index
    %72 = vector.load %arg9[%c0_55, %c2_56] : memref<4x128xf32, #tpu.memory_space<vmem>>, vector<4x36xf32>
    tpu.vector_store %arg9[%c0_55, %c2_56], %71 {strides = array<i32>} : memref<4x128xf32, #tpu.memory_space<vmem>>, vector<4x36xf32>,
    %73 = arith.extui %5 : i1 to i32
    %c0_i32_57 = arith.constant 0 : i32
    %74 = arith.cmpi ne, %73, %c0_i32_57 : i32
    scf.if %74 {
      %c12_i32_141 = arith.constant 12 : i32
      %178 = arith.subi %0, %c12_i32_141 : i32
      %c2_i32 = arith.constant 2 : i32
      %179 = arith.addi %178, %c2_i32 : i32
      %180 = tpu.iota {dimensions = array<i32: 1>} : vector<1x36xi32>
      %181 = vector.broadcast %179 : i32 to vector<1x36xi32>
      %182 = arith.addi %181, %180 : vector<1x36xi32>
      %c0_142 = arith.constant 0 : index
      %c2_143 = arith.constant 2 : index
      %183 = vector.load %arg9[%c0_142, %c2_143] : memref<4x128xf32, #tpu.memory_space<vmem>>, vector<4x36xf32>
      %c0_i32_144 = arith.constant 0 : i32
      %184 = vector.broadcast %c0_i32_144 : i32 to vector<1x36xi32>
      %185 = arith.cmpi sge, %182, %184 : vector<1x36xi32>
      %c16_i32_145 = arith.constant 16 : i32
      %186 = vector.broadcast %c16_i32_145 : i32 to vector<1x36xi32>
      %187 = arith.cmpi slt, %182, %186 : vector<1x36xi32>
      %188 = arith.andi %185, %187 : vector<1x36xi1>
      %c0_i32_146 = arith.constant 0 : i32
      %189 = arith.sitofp %c0_i32_146 : i32 to f32
      %190 = vector.shape_cast %188 : vector<1x36xi1> to vector<1x36xi1>
      %191 = vector.broadcast %190 : vector<1x36xi1> to vector<4x36xi1>
      %192 = vector.broadcast %189 : f32 to vector<4x36xf32>
      %193 = arith.select %191, %183, %192 : vector<4x36xi1>, vector<4x36xf32>
      %c0_147 = arith.constant 0 : index
      %c2_148 = arith.constant 2 : index
      %194 = vector.load %arg9[%c0_147, %c2_148] : memref<4x128xf32, #tpu.memory_space<vmem>>, vector<4x36xf32>
      tpu.vector_store %arg9[%c0_147, %c2_148], %193 {strides = array<i32>} : memref<4x128xf32, #tpu.memory_space<vmem>>, vector<4x36xf32>,
    } else {
    }
    %c1_58 = arith.constant 1 : index
    %c0_59 = arith.constant 0 : index
    %c0_60 = arith.constant 0 : index
    %75 = vector.load %arg3[%c1_58, %c0_59, %c0_60] : memref<3x4x12xf32, #tpu.memory_space<vmem>>, vector<1x4x12xf32>
    %76 = vector.shape_cast %75 : vector<1x4x12xf32> to vector<4x12xf32>
    %77 = vector.extract_strided_slice %76 {offsets = [0, 0], sizes = [4, 4], strides = [1, 1]} : vector<4x12xf32> to vector<4x4xf32>
    %c0_61 = arith.constant 0 : index
    %c2_62 = arith.constant 2 : index
    %78 = vector.load %arg9[%c0_61, %c2_62] : memref<4x128xf32, #tpu.memory_space<vmem>>, vector<4x30xf32>
    %cst_63 = arith.constant dense<0.000000e+00> : vector<4x30xf32>
    %79 = tpu.matmul %77, %78, %cst_63 {dimension_numbers = #tpu.dot_dimension_numbers<[1], [0], [0], [1], [0, 0, 1, 1], [], []>} : vector<4x4xf32>, vector<4x30xf32>, vector<4x30xf32> -> vector<4x30xf32>
    %80 = vector.extract_strided_slice %76 {offsets = [0, 4], sizes = [4, 4], strides = [1, 1]} : vector<4x12xf32> to vector<4x4xf32>
    %c0_64 = arith.constant 0 : index
    %c5 = arith.constant 5 : index
    %81 = vector.load %arg9[%c0_64, %c5] : memref<4x128xf32, #tpu.memory_space<vmem>>, vector<4x30xf32>
    %cst_65 = arith.constant dense<0.000000e+00> : vector<4x30xf32>
    %82 = tpu.matmul %80, %81, %cst_65 {dimension_numbers = #tpu.dot_dimension_numbers<[1], [0], [0], [1], [0, 0, 1, 1], [], []>} : vector<4x4xf32>, vector<4x30xf32>, vector<4x30xf32> -> vector<4x30xf32>
    %83 = arith.addf %79, %82 : vector<4x30xf32>
    %84 = vector.extract_strided_slice %76 {offsets = [0, 8], sizes = [4, 4], strides = [1, 1]} : vector<4x12xf32> to vector<4x4xf32>
    %c0_66 = arith.constant 0 : index
    %c8 = arith.constant 8 : index
    %85 = vector.load %arg9[%c0_66, %c8] : memref<4x128xf32, #tpu.memory_space<vmem>>, vector<4x30xf32>
    %cst_67 = arith.constant dense<0.000000e+00> : vector<4x30xf32>
    %86 = tpu.matmul %84, %85, %cst_67 {dimension_numbers = #tpu.dot_dimension_numbers<[1], [0], [0], [1], [0, 0, 1, 1], [], []>} : vector<4x4xf32>, vector<4x30xf32>, vector<4x30xf32> -> vector<4x30xf32>
    %87 = arith.addf %83, %86 : vector<4x30xf32>
    %c1_68 = arith.constant 1 : index
    %c0_69 = arith.constant 0 : index
    %c0_70 = arith.constant 0 : index
    %88 = vector.load %arg4[%c1_68, %c0_69, %c0_70] : memref<3x4x1xf32, #tpu.memory_space<vmem>>, vector<1x4x1xf32>
    %89 = vector.shape_cast %88 : vector<1x4x1xf32> to vector<4x1xf32>
    %90 = vector.broadcast %89 : vector<4x1xf32> to vector<4x30xf32>
    %91 = arith.addf %87, %90 : vector<4x30xf32>
    %cst_71 = arith.constant 0.000000e+00 : f32
    %92 = vector.broadcast %cst_71 : f32 to vector<4x30xf32>
    %93 = arith.cmpf ogt, %91, %92 : vector<4x30xf32>
    %cst_72 = arith.constant 0.00999999977 : f32
    %94 = vector.broadcast %cst_72 : f32 to vector<4x30xf32>
    %95 = arith.mulf %94, %91 : vector<4x30xf32>
    %96 = arith.select %93, %91, %95 : vector<4x30xi1>, vector<4x30xf32>
    %c0_73 = arith.constant 0 : index
    %c5_74 = arith.constant 5 : index
    %97 = vector.load %arg9[%c0_73, %c5_74] : memref<4x128xf32, #tpu.memory_space<vmem>>, vector<4x30xf32>
    tpu.vector_store %arg9[%c0_73, %c5_74], %96 {strides = array<i32>} : memref<4x128xf32, #tpu.memory_space<vmem>>, vector<4x30xf32>,
    %98 = arith.extui %5 : i1 to i32
    %c0_i32_75 = arith.constant 0 : i32
    %99 = arith.cmpi ne, %98, %c0_i32_75 : i32
    scf.if %99 {
      %c12_i32_141 = arith.constant 12 : i32
      %178 = arith.subi %0, %c12_i32_141 : i32
      %c5_i32 = arith.constant 5 : i32
      %179 = arith.addi %178, %c5_i32 : i32
      %180 = tpu.iota {dimensions = array<i32: 1>} : vector<1x30xi32>
      %181 = vector.broadcast %179 : i32 to vector<1x30xi32>
      %182 = arith.addi %181, %180 : vector<1x30xi32>
      %c0_142 = arith.constant 0 : index
      %c5_143 = arith.constant 5 : index
      %183 = vector.load %arg9[%c0_142, %c5_143] : memref<4x128xf32, #tpu.memory_space<vmem>>, vector<4x30xf32>
      %c0_i32_144 = arith.constant 0 : i32
      %184 = vector.broadcast %c0_i32_144 : i32 to vector<1x30xi32>
      %185 = arith.cmpi sge, %182, %184 : vector<1x30xi32>
      %c16_i32_145 = arith.constant 16 : i32
      %186 = vector.broadcast %c16_i32_145 : i32 to vector<1x30xi32>
      %187 = arith.cmpi slt, %182, %186 : vector<1x30xi32>
      %188 = arith.andi %185, %187 : vector<1x30xi1>
      %c0_i32_146 = arith.constant 0 : i32
      %189 = arith.sitofp %c0_i32_146 : i32 to f32
      %190 = vector.shape_cast %188 : vector<1x30xi1> to vector<1x30xi1>
      %191 = vector.broadcast %190 : vector<1x30xi1> to vector<4x30xi1>
      %192 = vector.broadcast %189 : f32 to vector<4x30xf32>
      %193 = arith.select %191, %183, %192 : vector<4x30xi1>, vector<4x30xf32>
      %c0_147 = arith.constant 0 : index
      %c5_148 = arith.constant 5 : index
      %194 = vector.load %arg9[%c0_147, %c5_148] : memref<4x128xf32, #tpu.memory_space<vmem>>, vector<4x30xf32>
      tpu.vector_store %arg9[%c0_147, %c5_148], %193 {strides = array<i32>} : memref<4x128xf32, #tpu.memory_space<vmem>>, vector<4x30xf32>,
    } else {
    }
    %c1_76 = arith.constant 1 : index
    %c0_77 = arith.constant 0 : index
    %c0_78 = arith.constant 0 : index
    %100 = vector.load %arg5[%c1_76, %c0_77, %c0_78] : memref<3x4x12xf32, #tpu.memory_space<vmem>>, vector<1x4x12xf32>
    %101 = vector.shape_cast %100 : vector<1x4x12xf32> to vector<4x12xf32>
    %102 = vector.extract_strided_slice %101 {offsets = [0, 0], sizes = [4, 4], strides = [1, 1]} : vector<4x12xf32> to vector<4x4xf32>
    %c0_79 = arith.constant 0 : index
    %c5_80 = arith.constant 5 : index
    %103 = vector.load %arg9[%c0_79, %c5_80] : memref<4x128xf32, #tpu.memory_space<vmem>>, vector<4x28xf32>
    %cst_81 = arith.constant dense<0.000000e+00> : vector<4x28xf32>
    %104 = tpu.matmul %102, %103, %cst_81 {dimension_numbers = #tpu.dot_dimension_numbers<[1], [0], [0], [1], [0, 0, 1, 1], [], []>} : vector<4x4xf32>, vector<4x28xf32>, vector<4x28xf32> -> vector<4x28xf32>
    %105 = vector.extract_strided_slice %101 {offsets = [0, 4], sizes = [4, 4], strides = [1, 1]} : vector<4x12xf32> to vector<4x4xf32>
    %c0_82 = arith.constant 0 : index
    %c6 = arith.constant 6 : index
    %106 = vector.load %arg9[%c0_82, %c6] : memref<4x128xf32, #tpu.memory_space<vmem>>, vector<4x28xf32>
    %cst_83 = arith.constant dense<0.000000e+00> : vector<4x28xf32>
    %107 = tpu.matmul %105, %106, %cst_83 {dimension_numbers = #tpu.dot_dimension_numbers<[1], [0], [0], [1], [0, 0, 1, 1], [], []>} : vector<4x4xf32>, vector<4x28xf32>, vector<4x28xf32> -> vector<4x28xf32>
    %108 = arith.addf %104, %107 : vector<4x28xf32>
    %109 = vector.extract_strided_slice %101 {offsets = [0, 8], sizes = [4, 4], strides = [1, 1]} : vector<4x12xf32> to vector<4x4xf32>
    %c0_84 = arith.constant 0 : index
    %c7 = arith.constant 7 : index
    %110 = vector.load %arg9[%c0_84, %c7] : memref<4x128xf32, #tpu.memory_space<vmem>>, vector<4x28xf32>
    %cst_85 = arith.constant dense<0.000000e+00> : vector<4x28xf32>
    %111 = tpu.matmul %109, %110, %cst_85 {dimension_numbers = #tpu.dot_dimension_numbers<[1], [0], [0], [1], [0, 0, 1, 1], [], []>} : vector<4x4xf32>, vector<4x28xf32>, vector<4x28xf32> -> vector<4x28xf32>
    %112 = arith.addf %108, %111 : vector<4x28xf32>
    %c1_86 = arith.constant 1 : index
    %c0_87 = arith.constant 0 : index
    %c0_88 = arith.constant 0 : index
    %113 = vector.load %arg6[%c1_86, %c0_87, %c0_88] : memref<3x4x1xf32, #tpu.memory_space<vmem>>, vector<1x4x1xf32>
    %114 = vector.shape_cast %113 : vector<1x4x1xf32> to vector<4x1xf32>
    %115 = vector.broadcast %114 : vector<4x1xf32> to vector<4x28xf32>
    %116 = arith.addf %112, %115 : vector<4x28xf32>
    %c0_89 = arith.constant 0 : index
    %c6_90 = arith.constant 6 : index
    %117 = vector.load %arg8[%c0_89, %c6_90] : memref<4x128xf32, #tpu.memory_space<vmem>>, vector<4x28xf32>
    %118 = arith.addf %117, %116 : vector<4x28xf32>
    %c0_91 = arith.constant 0 : index
    %c6_92 = arith.constant 6 : index
    %119 = vector.load %arg8[%c0_91, %c6_92] : memref<4x128xf32, #tpu.memory_space<vmem>>, vector<4x28xf32>
    tpu.vector_store %arg8[%c0_91, %c6_92], %118 {strides = array<i32>} : memref<4x128xf32, #tpu.memory_space<vmem>>, vector<4x28xf32>,
    %c0_93 = arith.constant 0 : index
    %c6_94 = arith.constant 6 : index
    %120 = vector.load %arg8[%c0_93, %c6_94] : memref<4x128xf32, #tpu.memory_space<vmem>>, vector<4x28xf32>
    %cst_95 = arith.constant 0.000000e+00 : f32
    %121 = vector.broadcast %cst_95 : f32 to vector<4x28xf32>
    %122 = arith.cmpf ogt, %120, %121 : vector<4x28xf32>
    %cst_96 = arith.constant 0.00999999977 : f32
    %123 = vector.broadcast %cst_96 : f32 to vector<4x28xf32>
    %124 = arith.mulf %123, %120 : vector<4x28xf32>
    %125 = arith.select %122, %120, %124 : vector<4x28xi1>, vector<4x28xf32>
    %c0_97 = arith.constant 0 : index
    %c6_98 = arith.constant 6 : index
    %126 = vector.load %arg9[%c0_97, %c6_98] : memref<4x128xf32, #tpu.memory_space<vmem>>, vector<4x28xf32>
    tpu.vector_store %arg9[%c0_97, %c6_98], %125 {strides = array<i32>} : memref<4x128xf32, #tpu.memory_space<vmem>>, vector<4x28xf32>,
    %127 = arith.extui %5 : i1 to i32
    %c0_i32_99 = arith.constant 0 : i32
    %128 = arith.cmpi ne, %127, %c0_i32_99 : i32
    scf.if %128 {
      %c12_i32_141 = arith.constant 12 : i32
      %178 = arith.subi %0, %c12_i32_141 : i32
      %c6_i32 = arith.constant 6 : i32
      %179 = arith.addi %178, %c6_i32 : i32
      %180 = tpu.iota {dimensions = array<i32: 1>} : vector<1x28xi32>
      %181 = vector.broadcast %179 : i32 to vector<1x28xi32>
      %182 = arith.addi %181, %180 : vector<1x28xi32>
      %c0_142 = arith.constant 0 : index
      %c6_143 = arith.constant 6 : index
      %183 = vector.load %arg9[%c0_142, %c6_143] : memref<4x128xf32, #tpu.memory_space<vmem>>, vector<4x28xf32>
      %c0_i32_144 = arith.constant 0 : i32
      %184 = vector.broadcast %c0_i32_144 : i32 to vector<1x28xi32>
      %185 = arith.cmpi sge, %182, %184 : vector<1x28xi32>
      %c16_i32_145 = arith.constant 16 : i32
      %186 = vector.broadcast %c16_i32_145 : i32 to vector<1x28xi32>
      %187 = arith.cmpi slt, %182, %186 : vector<1x28xi32>
      %188 = arith.andi %185, %187 : vector<1x28xi1>
      %c0_i32_146 = arith.constant 0 : i32
      %189 = arith.sitofp %c0_i32_146 : i32 to f32
      %190 = vector.shape_cast %188 : vector<1x28xi1> to vector<1x28xi1>
      %191 = vector.broadcast %190 : vector<1x28xi1> to vector<4x28xi1>
      %192 = vector.broadcast %189 : f32 to vector<4x28xf32>
      %193 = arith.select %191, %183, %192 : vector<4x28xi1>, vector<4x28xf32>
      %c0_147 = arith.constant 0 : index
      %c6_148 = arith.constant 6 : index
      %194 = vector.load %arg9[%c0_147, %c6_148] : memref<4x128xf32, #tpu.memory_space<vmem>>, vector<4x28xf32>
      tpu.vector_store %arg9[%c0_147, %c6_148], %193 {strides = array<i32>} : memref<4x128xf32, #tpu.memory_space<vmem>>, vector<4x28xf32>,
    } else {
    }
    %c2_100 = arith.constant 2 : index
    %c0_101 = arith.constant 0 : index
    %c0_102 = arith.constant 0 : index
    %129 = vector.load %arg3[%c2_100, %c0_101, %c0_102] : memref<3x4x12xf32, #tpu.memory_space<vmem>>, vector<1x4x12xf32>
    %130 = vector.shape_cast %129 : vector<1x4x12xf32> to vector<4x12xf32>
    %131 = vector.extract_strided_slice %130 {offsets = [0, 0], sizes = [4, 4], strides = [1, 1]} : vector<4x12xf32> to vector<4x4xf32>
    %c0_103 = arith.constant 0 : index
    %c6_104 = arith.constant 6 : index
    %132 = vector.load %arg9[%c0_103, %c6_104] : memref<4x128xf32, #tpu.memory_space<vmem>>, vector<4x18xf32>
    %cst_105 = arith.constant dense<0.000000e+00> : vector<4x18xf32>
    %133 = tpu.matmul %131, %132, %cst_105 {dimension_numbers = #tpu.dot_dimension_numbers<[1], [0], [0], [1], [0, 0, 1, 1], [], []>} : vector<4x4xf32>, vector<4x18xf32>, vector<4x18xf32> -> vector<4x18xf32>
    %134 = vector.extract_strided_slice %130 {offsets = [0, 4], sizes = [4, 4], strides = [1, 1]} : vector<4x12xf32> to vector<4x4xf32>
    %c0_106 = arith.constant 0 : index
    %c11 = arith.constant 11 : index
    %135 = vector.load %arg9[%c0_106, %c11] : memref<4x128xf32, #tpu.memory_space<vmem>>, vector<4x18xf32>
    %cst_107 = arith.constant dense<0.000000e+00> : vector<4x18xf32>
    %136 = tpu.matmul %134, %135, %cst_107 {dimension_numbers = #tpu.dot_dimension_numbers<[1], [0], [0], [1], [0, 0, 1, 1], [], []>} : vector<4x4xf32>, vector<4x18xf32>, vector<4x18xf32> -> vector<4x18xf32>
    %137 = arith.addf %133, %136 : vector<4x18xf32>
    %138 = vector.extract_strided_slice %130 {offsets = [0, 8], sizes = [4, 4], strides = [1, 1]} : vector<4x12xf32> to vector<4x4xf32>
    %c0_108 = arith.constant 0 : index
    %c16 = arith.constant 16 : index
    %139 = vector.load %arg9[%c0_108, %c16] : memref<4x128xf32, #tpu.memory_space<vmem>>, vector<4x18xf32>
    %cst_109 = arith.constant dense<0.000000e+00> : vector<4x18xf32>
    %140 = tpu.matmul %138, %139, %cst_109 {dimension_numbers = #tpu.dot_dimension_numbers<[1], [0], [0], [1], [0, 0, 1, 1], [], []>} : vector<4x4xf32>, vector<4x18xf32>, vector<4x18xf32> -> vector<4x18xf32>
    %141 = arith.addf %137, %140 : vector<4x18xf32>
    %c2_110 = arith.constant 2 : index
    %c0_111 = arith.constant 0 : index
    %c0_112 = arith.constant 0 : index
    %142 = vector.load %arg4[%c2_110, %c0_111, %c0_112] : memref<3x4x1xf32, #tpu.memory_space<vmem>>, vector<1x4x1xf32>
    %143 = vector.shape_cast %142 : vector<1x4x1xf32> to vector<4x1xf32>
    %144 = vector.broadcast %143 : vector<4x1xf32> to vector<4x18xf32>
    %145 = arith.addf %141, %144 : vector<4x18xf32>
    %cst_113 = arith.constant 0.000000e+00 : f32
    %146 = vector.broadcast %cst_113 : f32 to vector<4x18xf32>
    %147 = arith.cmpf ogt, %145, %146 : vector<4x18xf32>
    %cst_114 = arith.constant 0.00999999977 : f32
    %148 = vector.broadcast %cst_114 : f32 to vector<4x18xf32>
    %149 = arith.mulf %148, %145 : vector<4x18xf32>
    %150 = arith.select %147, %145, %149 : vector<4x18xi1>, vector<4x18xf32>
    %c0_115 = arith.constant 0 : index
    %c11_116 = arith.constant 11 : index
    %151 = vector.load %arg9[%c0_115, %c11_116] : memref<4x128xf32, #tpu.memory_space<vmem>>, vector<4x18xf32>
    tpu.vector_store %arg9[%c0_115, %c11_116], %150 {strides = array<i32>} : memref<4x128xf32, #tpu.memory_space<vmem>>, vector<4x18xf32>,
    %152 = arith.extui %5 : i1 to i32
    %c0_i32_117 = arith.constant 0 : i32
    %153 = arith.cmpi ne, %152, %c0_i32_117 : i32
    scf.if %153 {
      %c12_i32_141 = arith.constant 12 : i32
      %178 = arith.subi %0, %c12_i32_141 : i32
      %c11_i32 = arith.constant 11 : i32
      %179 = arith.addi %178, %c11_i32 : i32
      %180 = tpu.iota {dimensions = array<i32: 1>} : vector<1x18xi32>
      %181 = vector.broadcast %179 : i32 to vector<1x18xi32>
      %182 = arith.addi %181, %180 : vector<1x18xi32>
      %c0_142 = arith.constant 0 : index
      %c11_143 = arith.constant 11 : index
      %183 = vector.load %arg9[%c0_142, %c11_143] : memref<4x128xf32, #tpu.memory_space<vmem>>, vector<4x18xf32>
      %c0_i32_144 = arith.constant 0 : i32
      %184 = vector.broadcast %c0_i32_144 : i32 to vector<1x18xi32>
      %185 = arith.cmpi sge, %182, %184 : vector<1x18xi32>
      %c16_i32_145 = arith.constant 16 : i32
      %186 = vector.broadcast %c16_i32_145 : i32 to vector<1x18xi32>
      %187 = arith.cmpi slt, %182, %186 : vector<1x18xi32>
      %188 = arith.andi %185, %187 : vector<1x18xi1>
      %c0_i32_146 = arith.constant 0 : i32
      %189 = arith.sitofp %c0_i32_146 : i32 to f32
      %190 = vector.shape_cast %188 : vector<1x18xi1> to vector<1x18xi1>
      %191 = vector.broadcast %190 : vector<1x18xi1> to vector<4x18xi1>
      %192 = vector.broadcast %189 : f32 to vector<4x18xf32>
      %193 = arith.select %191, %183, %192 : vector<4x18xi1>, vector<4x18xf32>
      %c0_147 = arith.constant 0 : index
      %c11_148 = arith.constant 11 : index
      %194 = vector.load %arg9[%c0_147, %c11_148] : memref<4x128xf32, #tpu.memory_space<vmem>>, vector<4x18xf32>
      tpu.vector_store %arg9[%c0_147, %c11_148], %193 {strides = array<i32>} : memref<4x128xf32, #tpu.memory_space<vmem>>, vector<4x18xf32>,
    } else {
    }
    %c2_118 = arith.constant 2 : index
    %c0_119 = arith.constant 0 : index
    %c0_120 = arith.constant 0 : index
    %154 = vector.load %arg5[%c2_118, %c0_119, %c0_120] : memref<3x4x12xf32, #tpu.memory_space<vmem>>, vector<1x4x12xf32>
    %155 = vector.shape_cast %154 : vector<1x4x12xf32> to vector<4x12xf32>
    %156 = vector.extract_strided_slice %155 {offsets = [0, 0], sizes = [4, 4], strides = [1, 1]} : vector<4x12xf32> to vector<4x4xf32>
    %c0_121 = arith.constant 0 : index
    %c11_122 = arith.constant 11 : index
    %157 = vector.load %arg9[%c0_121, %c11_122] : memref<4x128xf32, #tpu.memory_space<vmem>>, vector<4x16xf32>
    %cst_123 = arith.constant dense<0.000000e+00> : vector<4x16xf32>
    %158 = tpu.matmul %156, %157, %cst_123 {dimension_numbers = #tpu.dot_dimension_numbers<[1], [0], [0], [1], [0, 0, 1, 1], [], []>} : vector<4x4xf32>, vector<4x16xf32>, vector<4x16xf32> -> vector<4x16xf32>
    %159 = vector.extract_strided_slice %155 {offsets = [0, 4], sizes = [4, 4], strides = [1, 1]} : vector<4x12xf32> to vector<4x4xf32>
    %c0_124 = arith.constant 0 : index
    %c12_125 = arith.constant 12 : index
    %160 = vector.load %arg9[%c0_124, %c12_125] : memref<4x128xf32, #tpu.memory_space<vmem>>, vector<4x16xf32>
    %cst_126 = arith.constant dense<0.000000e+00> : vector<4x16xf32>
    %161 = tpu.matmul %159, %160, %cst_126 {dimension_numbers = #tpu.dot_dimension_numbers<[1], [0], [0], [1], [0, 0, 1, 1], [], []>} : vector<4x4xf32>, vector<4x16xf32>, vector<4x16xf32> -> vector<4x16xf32>
    %162 = arith.addf %158, %161 : vector<4x16xf32>
    %163 = vector.extract_strided_slice %155 {offsets = [0, 8], sizes = [4, 4], strides = [1, 1]} : vector<4x12xf32> to vector<4x4xf32>
    %c0_127 = arith.constant 0 : index
    %c13 = arith.constant 13 : index
    %164 = vector.load %arg9[%c0_127, %c13] : memref<4x128xf32, #tpu.memory_space<vmem>>, vector<4x16xf32>
    %cst_128 = arith.constant dense<0.000000e+00> : vector<4x16xf32>
    %165 = tpu.matmul %163, %164, %cst_128 {dimension_numbers = #tpu.dot_dimension_numbers<[1], [0], [0], [1], [0, 0, 1, 1], [], []>} : vector<4x4xf32>, vector<4x16xf32>, vector<4x16xf32> -> vector<4x16xf32>
    %166 = arith.addf %162, %165 : vector<4x16xf32>
    %c2_129 = arith.constant 2 : index
    %c0_130 = arith.constant 0 : index
    %c0_131 = arith.constant 0 : index
    %167 = vector.load %arg6[%c2_129, %c0_130, %c0_131] : memref<3x4x1xf32, #tpu.memory_space<vmem>>, vector<1x4x1xf32>
    %168 = vector.shape_cast %167 : vector<1x4x1xf32> to vector<4x1xf32>
    %169 = vector.broadcast %168 : vector<4x1xf32> to vector<4x16xf32>
    %170 = arith.addf %166, %169 : vector<4x16xf32>
    %c0_132 = arith.constant 0 : index
    %c12_133 = arith.constant 12 : index
    %171 = vector.load %arg8[%c0_132, %c12_133] : memref<4x128xf32, #tpu.memory_space<vmem>>, vector<4x16xf32>
    %172 = arith.addf %171, %170 : vector<4x16xf32>
    %c0_134 = arith.constant 0 : index
    %c12_135 = arith.constant 12 : index
    %173 = vector.load %arg8[%c0_134, %c12_135] : memref<4x128xf32, #tpu.memory_space<vmem>>, vector<4x16xf32>
    tpu.vector_store %arg8[%c0_134, %c12_135], %172 {strides = array<i32>} : memref<4x128xf32, #tpu.memory_space<vmem>>, vector<4x16xf32>,
    %c0_136 = arith.constant 0 : index
    %c12_137 = arith.constant 12 : index
    %174 = vector.load %arg8[%c0_136, %c12_137] : memref<4x128xf32, #tpu.memory_space<vmem>>, vector<4x16xf32>
    %c0_138 = arith.constant 0 : index
    %c0_139 = arith.constant 0 : index
    %c0_140 = arith.constant 0 : index
    %175 = vector.load %arg7[%c0_138, %c0_139, %c0_140] : memref<1x4x16xf32, #tpu.memory_space<vmem>>, vector<1x4x16xf32>
    %176 = vector.shape_cast %175 : vector<1x4x16xf32> to vector<4x16xf32>
    %177 = vector.shape_cast %174 : vector<4x16xf32> to vector<1x4x16xf32>
    tpu.vector_store %arg7[%c0_138, %c0_139, %c0_140], %177 {strides = array<i32>} : memref<1x4x16xf32, #tpu.memory_space<vmem>>, vector<1x4x16xf32>,
    return
  }
  func.func @transform_0(%arg0: i32, %arg1: i32) -> (i32, i32, i32) {
    %c0_i32 = arith.constant 0 : i32
    %c0_i32_0 = arith.constant 0 : i32
    return %arg0, %c0_i32, %arg1 : i32, i32, i32
  }
  func.func @transform_1(%arg0: i32, %arg1: i32) -> (i32, i32, i32) {
    %c0_i32 = arith.constant 0 : i32
    %c0_i32_0 = arith.constant 0 : i32
    %c0_i32_1 = arith.constant 0 : i32
    %c0_i32_2 = arith.constant 0 : i32
    return %c0_i32, %c0_i32_0, %c0_i32_1 : i32, i32, i32
  }
  func.func @transform_2(%arg0: i32, %arg1: i32) -> (i32, i32, i32) {
    %c0_i32 = arith.constant 0 : i32
    %c0_i32_0 = arith.constant 0 : i32
    %c0_i32_1 = arith.constant 0 : i32
    %c0_i32_2 = arith.constant 0 : i32
    return %c0_i32, %c0_i32_0, %c0_i32_1 : i32, i32, i32
  }
  func.func @transform_3(%arg0: i32, %arg1: i32) -> (i32, i32, i32) {
    %c0_i32 = arith.constant 0 : i32
    %c0_i32_0 = arith.constant 0 : i32
    %c0_i32_1 = arith.constant 0 : i32
    %c0_i32_2 = arith.constant 0 : i32
    return %c0_i32, %c0_i32_0, %c0_i32_1 : i32, i32, i32
  }
  func.func @transform_4(%arg0: i32, %arg1: i32) -> (i32, i32, i32) {
    %c0_i32 = arith.constant 0 : i32
    %c0_i32_0 = arith.constant 0 : i32
    %c0_i32_1 = arith.constant 0 : i32
    %c0_i32_2 = arith.constant 0 : i32
    return %c0_i32, %c0_i32_0, %c0_i32_1 : i32, i32, i32
  }
  func.func @transform_5(%arg0: i32, %arg1: i32) -> (i32, i32, i32) {
    %c0_i32 = arith.constant 0 : i32
    %c0_i32_0 = arith.constant 0 : i32
    return %arg0, %c0_i32, %arg1 : i32, i32, i32
  }
}

</mosaic_0001>

<bundles_post_ra>
// kernel: tpu_custom_call.1
= control target key start
LH: loop header
LB: loop body
LE: loop exit
PB: predicated region body
PF: predicated region fallthrough
CT: control target
= control target key end

     0   :  { %10 = vsyncpa [#allocation5], 0  ;;  %s1707_s0 = inlined_call_operand.hbm [shape: f32[2,4,16], index: 0, kind: input, shape index: {}]   ;;  %s1708_s1 = inlined_call_operand.vmem [shape: f32[3,4,12], index: 1, kind: input, shape index: {}]   ;;  %s1709_s2 = inlined_call_operand.vmem [shape: f32[3,4,1], index: 2, kind: input, shape index: {}]   ;;  %s1710_s3 = inlined_call_operand.vmem [shape: f32[3,4,12], index: 3, kind: input, shape index: {}]   ;;  %s1711_s4 = inlined_call_operand.vmem [shape: f32[3,4,1], index: 4, kind: input, shape index: {}]   ;;  %s1712_s5 = inlined_call_operand.hbm [shape: f32[2,4,16], index: 5, kind: output, shape index: {}]  }
   0x1   :  { %12 = vsyncpa [#allocation5 + $0x1], 0 }
   0x2   :  { %13 = vsyncpa [#allocation6], 0 }
   0x3   :  { %15 = vsyncpa [#allocation6 + $0x1], 0  ;;  %s1458_s18 = smov 0   ;;  %s1460_s19 = smov 0  }
   0x4   :  { %s1462_s20 = smov 0   ;;  %s1464_s21 = smov 0  }
   0x5   :  { %s1466_s22 = smov 0   ;;  %s1468_s23 = smov 0  }
   0x6 LB: > { %s1153_s24 = sadd.s32 4294967295, %s1406_s23   ;;  %s1154_s25 = sadd.s32 4294967294, %s1406_s23   ;;  %s1406_s23 = sphi %s1468_s23, %s21_s23   ;;  %s1402_s22 = sphi %s1466_s22, %s1721_s22   ;;  %s1398_s21 = sphi %s1464_s21, %s1720_s21   ;;  %s1394_s20 = sphi %s1462_s20, %s1719_s20   ;;  %s1390_s19 = sphi %s1460_s19, %s1718_s19   ;;  %s1386_s18 = sphi %s1458_s18, %s1717_s18  }
   0x7   : > { %s33_s26 = sadd.s32 1, %s1402_s22  ;;  %s42_s27 = sadd.s32 1, %s1394_s20 }
   0x8   : > { %p35_p0 = scmp.ge.s32.totalorder %s33_s26, 2  ;;  %p49_p1 = scmp.ne.s32.totalorder %s1394_s20, %s1390_s19 }
   0x9   : > { %p50_p2 = scmp.eq.s32.totalorder %s1406_s23, 0  ;;  %p55_p3 = scmp.ne.s32.totalorder %s1390_s19, %s1386_s18 }
   0xa   : > { %s1723_s26 = smov (%p35_p0, %s33_s26), 0  ;;  %p56_p5 = scmp.eq.s32.totalorder %s1153_s24, 0 }
   0xb   : > { %p1499_p4 = por %p50_p2, %p49_p1  ;;  %s37_s29 = ssub.s32 %s1402_s22, %s1723_s26 }
   0xc   : > { %p165_p6 = scmp.eq.s32.totalorder %s1153_s24, 1  ;;  %p40_p7 = scmp.eq.s32.totalorder %s37_s29, 0 }
   0xd   : > { %p1505_p8 = por %p56_p5, %p55_p3  ;;  %p171_p10 = scmp.eq.s32.totalorder %s1154_s25, 1 }
   0xe   : > { %p1509_p9 = por %p165_p6, %p49_p1  ;;  %p1156_p12 = scmp.ge.s32.totalorder %s1406_s23, 2 }
   0xf   : > { %s1514_s7 = scalar_select %p40_p7, %s1394_s20, %s42_s27  }
  0x10   : > { %p1516_p11 = por %p171_p10, %p55_p3  ;;  %p1222_p13 = scmp.lt.s32.totalorder %s1406_s23, 2 }
  0x11   : > { %s203_s9 = sand.u32 1, %s1394_s20   ;;  %s1158_s11 = sshll.u32 %s1402_s22, 2 }
  0x12   : > { %s1157_s10 = sshll.u32 %s203_s9, 2  ;;  %s212_s14 = scalar_lea.hbm %s1707_s0, %s1158_s11 }
  0x13   : > { %s207_s15 = scalar_lea.vmem [#allocation4], %s1157_s10  ;;  %s214_s17 = sshll.u32 %s212_s14, 4  ;;  %s215_s17 = int_to_ptr.hbm [resolvable:$true] %s214_s17 }
  0x14   : > { %s216_s16 = sshll.u32 %s207_s15, 4  ;;  %p1215_p0 = pnand %p1222_p13, %p1499_p4  ;;  %s217_s16 = int_to_ptr.vmem [resolvable:$true] %s216_s16 }
  0x15   : > { %p1159_p1 = scmp.ge.s32.totalorder %s1406_s23, 1  ;;  %p221_p2 = scmp.lt.s32.totalorder %s1406_s23, 3 }
  0x16   : > { %s204_s24 = scalar_lea.sflag [#allocation5], %s203_s9 }
  0x17   : > { %1217 = dma.hbm_to_vmem [thread:$0]  (!%p1215_p0), %s215_s17, 64, %s217_s16, %s204_s24  }
  0x18   : > { %p222_p3 = pnand %p1159_p1, %p221_p2 }
  0x19   : > { %s1532_s25 = sand.u32 (!%p222_p3), 1, %s1390_s19  }
  0x1a   : > { %225 = sbr.rel (%p222_p3) target bundleno = 3672 (0xe58), region = 40  ;;  %s1160_s27 = sshll.u32 (!%p222_p3), %s1532_s25, 2 }
  0x1b   : > { %s228_s29 = scalar_lea.sflag (!%p222_p3), [#allocation5], %s1532_s25  ;;  %s231_s10 = scalar_lea.vmem (!%p222_p3), [#allocation4], %s1160_s27 }
  0x1f   : > { %1377 = dma.done.wait (%p1505_p8), %s228_s29, 64  }
  0x20   : > { %1379 = vsyncadd (%p1505_p8), %s228_s29, 4294967232  ;;  %v264_v0 = vld [vmem:[%s231_s10] sm:$0xf]  ;;  %s1408_s28 = smov 12   ;;  %v297_v1 = vld [vmem:[%s1708_s1] sm:$0xf]  ;;  %v285_v4 = vlaneseq }
  0x21   : > { %266 = vrot.lane.b32.xlu0 %v264_v0, %s1408_s28  ;;  %s1409_s12 = smov 120   ;;  %s1410_s13 = smov 124   ;;  %vm269_vm0 = vcmask 224352   ;;  %vm271_vm1 = vcmask 93184   ;;  %vm273_vm2 = vcmask 322784   ;;  %v1411_v3 = vmov 0.0  }
  0x22   : > { %355 = vrot.lane.b32.xlu1 %v297_v1, %s1409_s12  ;;  %300 = vrot.lane.b32.xlu2 %v297_v1, %s1410_s13  ;;  %v1549_v5 = vand.u32 127, %v285_v4  ;;  %vm279_vm3 = vcmask 322560   ;;  %s1412_s30 = smov 126   ;;  %s1413_s14 = smov 127   ;;  %vm308_vm8 = vcmask 1043456   ;;  %vm305_vm9 = vcmask 31744  }
  0x23   : > { %v384_v13 = vld [vmem:[%s1709_s2] sm:$0xf]  ;;  %v1414_v14 = vmov 0   ;;  %s1415_s17 = smov 1   ;;  %vm398_vm11 = vcmask 314376   ;;  %s1416_s11 = smov 125  }
  0x24   : > { %v288_v8 = vadd.s32 4294967284, %v1549_v5  ;;  %1292 = vset.pattern.permute.xlu2 %v1414_v14  ;;  %1293 = vset.pattern.permute.xlu0 %v1414_v14  ;;  %v407_v30 = vadd.s32 4294967285, %v1549_v5  ;;  %v424_v33 = vld [vmem:[%s1710_s3] sm:$0xf]  ;;  %vm524_vm15 = vcmask 306192   ;;  %v538_v56 = vadd.s32 4294967286, %v1549_v5 }
  0x25   : > { %v511_v36 = vld [vmem:[%s1711_s4] sm:$0xf]  ;;  %v1174_v59 = vld [vmem:[%s1708_s1 + $0x4] sm:$0xf]  ;;  %s1418_s29 = smov 123   ;;  %s1420_s15 = smov 121  }
  0x26   : > { %vm290_vm5 = vcmp.ge.s32.totalorder %v288_v8, 0  ;;  %vm291_vm6 = vcmp.lt.s32.totalorder %v288_v8, 16  ;;  %vm409_vm12 = vcmp.ge.s32.totalorder %v407_v30, 0  ;;  %vm410_vm13 = vcmp.lt.s32.totalorder %v407_v30, 16  ;;  %v1181_v60 = vld [vmem:[%s1709_s2 + $0x4] sm:$0xf] }
  0x27   : > { %vm292_vm7 = vmand %vm290_vm5, %vm291_vm6  ;;  %vm658_vm6 = vcmask 281640   ;;  %s1421_s16 = smov 122   ;;  %s1424_s10 = smov 112  }
  0x28   : > { %vm411_vm14 = vmand %vm409_vm12, %vm410_vm13  ;;  %vm786_vm12 = vcmask 273456  }
  0x2a   : > { %387 = vperm.xlu2 %1292, %v384_v13  }
  0x7c   : > { %v301_v16 = vpop.permute.xlu2 %300 }
  0x84   : > { %v388_v23 = vpop.permute.xlu2 %387 }
  0x93   : > { %v267_v2 = vpop.permute.xlu0 %266 }
  0x94   : > { %270 = vst.msk [vmem:[#allocation2] sm:$0xf] %vm269_vm0, %v267_v2  ;;  %v356_v15 = vpop.permute.xlu1 %355 }
  0x95   : > { %272 = vst.msk [vmem:[#allocation2] sm:$0xf] %vm271_vm1, %v1411_v3 }
  0x96   : > { %274 = vst.msk [vmem:[#allocation2] sm:$0xf] %vm273_vm2, %v1411_v3  ;;  %vm540_vm2 = vcmp.ge.s32.totalorder %v538_v56, 0 }
  0x9d   : > { %v275_v6 = vld [vmem:[#allocation2] sm:$0xf] }
  0x9e   : > { %vm276_vm4 = vcmp.gt.f32.partialorder %v275_v6, 0.0  ;;  %v277_v7 = vmul.f32 0.01, %v275_v6  ;;  %v518_v49 = vld [vmem:[#allocation2] sm:$0xf] }
  0xa0   : > { %v278_v9 = vsel %vm276_vm4, %v275_v6, %v277_v7 }
  0xa1   : > { %280 = vst.msk [vmem:[#allocation3] sm:$0xf] %vm279_vm3, %v278_v9 }
  0xa8   : > { %v289_v10 = vld [vmem:[#allocation3] sm:$0xf] }
  0xa9   : > { %v295_v11 = vsel %vm292_vm7, %v289_v10, 0.0 }
  0xaa   : > { %296 = vst.msk [vmem:[#allocation3] sm:$0xf] %vm279_vm3, %v295_v11  ;;  %vm541_vm3 = vcmp.lt.s32.totalorder %v538_v56, 16 }
  0xab   : > { %vm542_vm4 = vmand %vm540_vm2, %vm541_vm3  ;;  %vm920_vm3 = vcmask 232536  }
  0xb1   : > { %v298_v12 = vld [vmem:[#allocation3] sm:$0xf] }
  0xb2   : > { %357 = vrot.lane.b32.xlu0 %v298_v12, %s1412_s30  ;;  %303 = vrot.lane.b32.xlu1 %v298_v12, %s1413_s14 }
  0xb3   : > { %1164 = vmatpush.msk.msra.mxu1 %vm308_vm8, %v298_v12 }
  0xb4   : > { %1165 = vmatmul.msk.f32.vlgmr.msra.gmra.mxu1 %vm305_vm9, %v297_v1 }
 0x124   : > { %v358_v17 = vpop.permute.xlu0 %357  ;;  %v304_v18 = vpop.permute.xlu1 %303 }
 0x125   : > { %1166 = vmatpush.msk.msra.mxu2 %vm308_vm8, %v358_v17  ;;  %1162 = vmatpush.msk.msra.mxu0 %vm308_vm8, %v304_v18 }
 0x126   : > { %1167 = vmatmul.msk.f32.vlgmr.msra.gmra.mxu2 %vm305_vm9, %v356_v15  ;;  %1163 = vmatmul.msk.f32.vlgmr.msra.gmra.mxu0 %vm305_vm9, %v301_v16  ;;  %v667_v16 = vadd.s32 4294967289, %v1549_v5 }
 0x128   : > { %vm669_vm7 = vcmp.ge.s32.totalorder %v667_v16, 0 }
 0x131   : > { %v352_v20 = vpop.f32.mrf.mxu1 }
 0x1a3   : > { %v328_v19 = vpop.f32.mrf.mxu0 }
 0x1a4   : > { %v353_v21 = vadd.f32 %v352_v20, %v328_v19  ;;  %v1182_v19 = vld [vmem:[%s1710_s3 + $0x4] sm:$0xf] }
 0x1a5   : > { %v1189_v20 = vld [vmem:[%s1711_s4 + $0x4] sm:$0xf] }
 0x1a9   : > { %v380_v22 = vpop.f32.mrf.mxu2 }
 0x1aa   : > { %v383_v24 = vadd.f32 %v380_v22, %v353_v21 }
 0x1ac   : > { %v390_v25 = vadd.f32 %v388_v23, %v383_v24 }
 0x1ae   : > { %v392_v26 = vmul.f32 0.01, %v390_v25  ;;  %vm391_vm10 = vcmp.gt.f32.partialorder %v390_v25, 0.0 }
 0x1b0   : > { %v393_v27 = vsel %vm391_vm10, %v390_v25, %v392_v26  ;;  %vm670_vm10 = vcmp.lt.s32.totalorder %v667_v16, 16 }
 0x1b1   : > { %395 = vrot.lane.b32.xlu0 %v393_v27, %s1415_s17 }
 0x223   : > { %v396_v28 = vpop.permute.xlu0 %395 }
 0x224   : > { %399 = vst.msk [vmem:[#allocation3] sm:$0xf] %vm398_vm11, %v396_v28 }
 0x22b   : > { %v408_v29 = vld [vmem:[#allocation3] sm:$0xf] }
 0x22c   : > { %415 = vrot.lane.b32.xlu1 %v408_v29, %s1413_s14 }
 0x234   : > { %427 = vrot.lane.b32.xlu1 %v424_v33, %s1410_s13 }
 0x23c   : > { %482 = vrot.lane.b32.xlu1 %v424_v33, %s1409_s12 }
 0x29e   : > { %v416_v31 = vpop.permute.xlu1 %415 }
 0x29f   : > { %v418_v32 = vsel %vm411_vm14, %v416_v31, 0.0 }
 0x2a0   : > { %420 = vrot.lane.b32.xlu2 %v418_v32, %s1415_s17  ;;  %s1422_s17 = smov 6  }
 0x2a6   : > { %v428_v38 = vpop.permute.xlu1 %427 }
 0x2ae   : > { %v483_v40 = vpop.permute.xlu1 %482 }
 0x2fa   : > { %v421_v34 = vpop.permute.xlu2 %420 }
 0x2fb   : > { %423 = vst.msk [vmem:[#allocation3] sm:$0xf] %vm398_vm11, %v421_v34  ;;  %vm671_vm11 = vmand %vm669_vm7, %vm670_vm10 }
 0x302   : > { %v425_v35 = vld [vmem:[#allocation3] sm:$0xf] }
 0x303   : > { %456 = vrot.lane.b32.xlu2 %v425_v35, %s1413_s14  ;;  %430 = vrot.lane.b32.xlu0 %v425_v35, %s1412_s30  ;;  %s1417_s14 = smov 2  }
 0x30b   : > { %514 = vperm.xlu2 %1292, %v511_v36   ;;  %484 = vrot.lane.b32.xlu0 %v425_v35, %s1416_s11  ;;  %s258_s11 = scalar_lea.vmem [#allocation7], %s1160_s27 }
 0x35d   : > { %v457_v37 = vpop.permute.xlu2 %456 }
 0x35e   : > { %1170 = vmatpush.msk.msrb.mxu0 %vm308_vm8, %v457_v37 }
 0x35f   : > { %1171 = vmatmul.msk.f32.vlgmr.msrb.gmra.mxu0 %vm305_vm9, %v424_v33 }
 0x365   : > { %v515_v47 = vpop.permute.xlu2 %514 }
 0x375   : > { %v431_v39 = vpop.permute.xlu0 %430 }
 0x376   : > { %1168 = vmatpush.msk.msra.mxu3 %vm308_vm8, %v431_v39 }
 0x377   : > { %1169 = vmatmul.msk.f32.vlgmr.msra.gmra.mxu3 %vm305_vm9, %v428_v38 }
 0x37d   : > { %v485_v41 = vpop.permute.xlu0 %484 }
 0x37e   : > { %1172 = vmatpush.msk.msrb.mxu1 %vm308_vm8, %v485_v41 }
 0x37f   : > { %1173 = vmatmul.msk.f32.vlgmr.msrb.gmra.mxu1 %vm305_vm9, %v483_v40 }
 0x3dc   : > { %v479_v42 = vpop.f32.mrf.mxu0 }
 0x3fa   : > { %v453_v43 = vpop.f32.mrf.mxu3 }
 0x3fb   : > { %v480_v44 = vadd.f32 %v479_v42, %v453_v43  ;;  %v800_v42 = vadd.s32 4294967290, %v1549_v5 }
 0x3fc   : > { %v507_v45 = vpop.f32.mrf.mxu1 }
 0x3fd   : > { %v510_v46 = vadd.f32 %v507_v45, %v480_v44  ;;  %vm802_vm14 = vcmp.ge.s32.totalorder %v800_v42, 0  ;;  %v1190_v45 = vld [vmem:[%s1708_s1 + $0x8] sm:$0xf] }
 0x3ff   : > { %v517_v48 = vadd.f32 %v515_v47, %v510_v46 }
 0x401   : > { %520 = vrot.lane.b32.xlu0 %v517_v48, %s1417_s14  ;;  %v1197_v48 = vld [vmem:[%s1709_s2 + $0x8] sm:$0xf] }
 0x473   : > { %v521_v50 = vpop.permute.xlu0 %520 }
 0x474   : > { %v523_v51 = vadd.f32 %v521_v50, %v518_v49 }
 0x476   : > { %525 = vst.msk [vmem:[#allocation2] sm:$0xf] %vm524_vm15, %v523_v51 }
 0x47d   : > { %v526_v52 = vld [vmem:[#allocation2] sm:$0xf] }
 0x47e   : > { %vm527_vm1 = vcmp.gt.f32.partialorder %v526_v52, 0.0  ;;  %v528_v53 = vmul.f32 0.01, %v526_v52  ;;  %v780_v35 = vld [vmem:[#allocation2] sm:$0xf] }
 0x480   : > { %v529_v54 = vsel %vm527_vm1, %v526_v52, %v528_v53 }
 0x481   : > { %530 = vst.msk [vmem:[#allocation3] sm:$0xf] %vm524_vm15, %v529_v54 }
 0x488   : > { %v539_v55 = vld [vmem:[#allocation3] sm:$0xf] }
 0x489   : > { %546 = vrot.lane.b32.xlu1 %v539_v55, %s1412_s30 }
 0x4fb   : > { %v547_v57 = vpop.permute.xlu1 %546 }
 0x4fc   : > { %v549_v58 = vsel %vm542_vm4, %v547_v57, 0.0 }
 0x4fd   : > { %551 = vrot.lane.b32.xlu2 %v549_v58, %s1417_s14  ;;  %s1425_s14 = smov 11  }
 0x505   : > { %559 = vrot.lane.b32.xlu2 %v1174_v59, %s1410_s13 }
 0x50d   : > { %647 = vperm.xlu2 %1292, %v1181_v60  }
 0x557   : > { %v552_v61 = vpop.permute.xlu2 %551 }
 0x558   : > { %554 = vst.msk [vmem:[#allocation3] sm:$0xf] %vm524_vm15, %v552_v61  ;;  %vm803_vm15 = vcmp.lt.s32.totalorder %v800_v42, 16 }
 0x559   : > { %vm804_vm1 = vmand %vm802_vm14, %vm803_vm15 }
 0x55f   : > { %v557_v62 = vld [vmem:[#allocation3] sm:$0xf]  ;;  %v560_v1 = vpop.permute.xlu2 %559 }
 0x560   : > { %588 = vrot.lane.b32.xlu1 %v557_v62, %s1412_s30  ;;  %562 = vrot.lane.b32.xlu0 %v557_v62, %s1418_s29  ;;  %s1419_s30 = smov 5  }
 0x567   : > { %v648_v10 = vpop.permute.xlu2 %647 }
 0x568   : > { %616 = vrot.lane.b32.xlu0 %v557_v62, %s1409_s12  ;;  %614 = vrot.lane.b32.xlu1 %v1174_v59, %s1409_s12 }
 0x5d2   : > { %v589_v63 = vpop.permute.xlu1 %588  ;;  %v563_v0 = vpop.permute.xlu0 %562 }
 0x5d3   : > { %1175 = vmatpush.msk.msrb.mxu2 %vm308_vm8, %v563_v0  ;;  %1177 = vmatpush.msk.msrb.mxu3 %vm308_vm8, %v589_v63 }
 0x5d4   : > { %1176 = vmatmul.msk.f32.vlgmr.msrb.gmra.mxu2 %vm305_vm9, %v560_v1  ;;  %1178 = vmatmul.msk.f32.vlgmr.msrb.gmra.mxu3 %vm305_vm9, %v1174_v59  ;;  %v929_v1 = vadd.s32 4294967295, %v1549_v5  ;;  %v1205_v5 = vld [vmem:[%s1711_s4 + $0x8] sm:$0xf] }
 0x5d6   : > { %vm931_vm4 = vcmp.ge.s32.totalorder %v929_v1, 0 }
 0x5da   : > { %v617_v2 = vpop.permute.xlu0 %616  ;;  %v615_v3 = vpop.permute.xlu1 %614 }
 0x5db   : > { %1179 = vmatpush.msk.msra.mxu0 %vm308_vm8, %v617_v2 }
 0x5dc   : > { %1180 = vmatmul.msk.f32.vlgmr.msra.gmra.mxu0 %vm305_vm9, %v615_v3 }
 0x657   : > { %v585_v4 = vpop.f32.mrf.mxu2  ;;  %v611_v6 = vpop.f32.mrf.mxu3 }
 0x658   : > { %v612_v7 = vadd.f32 %v611_v6, %v585_v4  ;;  %v1198_v4 = vld [vmem:[%s1710_s3 + $0x8] sm:$0xf] }
 0x659   : > { %v639_v8 = vpop.f32.mrf.mxu0 }
 0x65a   : > { %v642_v9 = vadd.f32 %v639_v8, %v612_v7 }
 0x65c   : > { %v650_v11 = vadd.f32 %v648_v10, %v642_v9 }
 0x65e   : > { %vm651_vm5 = vcmp.gt.f32.partialorder %v650_v11, 0.0  ;;  %v652_v12 = vmul.f32 0.01, %v650_v11 }
 0x660   : > { %v653_v13 = vsel %vm651_vm5, %v650_v11, %v652_v12  ;;  %vm932_vm5 = vcmp.lt.s32.totalorder %v929_v1, 16 }
 0x661   : > { %655 = vrot.lane.b32.xlu0 %v653_v13, %s1419_s30 }
 0x6d3   : > { %v656_v14 = vpop.permute.xlu0 %655 }
 0x6d4   : > { %659 = vst.msk [vmem:[#allocation3] sm:$0xf] %vm658_vm6, %v656_v14 }
 0x6db   : > { %v668_v15 = vld [vmem:[#allocation3] sm:$0xf] }
 0x6dc   : > { %675 = vrot.lane.b32.xlu1 %v668_v15, %s1418_s29 }
 0x74e   : > { %v676_v17 = vpop.permute.xlu1 %675 }
 0x74f   : > { %v678_v18 = vsel %vm671_vm11, %v676_v17, 0.0 }
 0x750   : > { %680 = vrot.lane.b32.xlu2 %v678_v18, %s1419_s30  ;;  %s1423_s30 = smov 117  }
 0x758   : > { %743 = vrot.lane.b32.xlu2 %v1182_v19, %s1409_s12 }
 0x760   : > { %776 = vperm.xlu2 %1292, %v1189_v20  }
 0x7aa   : > { %v681_v21 = vpop.permute.xlu2 %680 }
 0x7ab   : > { %683 = vst.msk [vmem:[#allocation3] sm:$0xf] %vm658_vm6, %v681_v21  ;;  %vm933_vm6 = vmand %vm931_vm4, %vm932_vm5 }
 0x7b2   : > { %v686_v22 = vld [vmem:[#allocation3] sm:$0xf]  ;;  %v744_v25 = vpop.permute.xlu2 %743 }
 0x7b3   : > { %745 = vrot.lane.b32.xlu1 %v686_v22, %s1420_s15  ;;  %717 = vrot.lane.b32.xlu0 %v686_v22, %s1418_s29  ;;  %s1344_s29 = scalar_lea.hbm %s1712_s5, 8 }
 0x7ba   : > { %v777_v33 = vpop.permute.xlu2 %776 }
 0x7bb   : > { %691 = vrot.lane.b32.xlu0 %v686_v22, %s1421_s16  ;;  %688 = vrot.lane.b32.xlu1 %v1182_v19, %s1410_s13 }
 0x825   : > { %v746_v23 = vpop.permute.xlu1 %745  ;;  %v718_v24 = vpop.permute.xlu0 %717 }
 0x826   : > { %1185 = vmatpush.msk.msra.mxu2 %vm308_vm8, %v718_v24  ;;  %1187 = vmatpush.msk.msra.mxu3 %vm308_vm8, %v746_v23 }
 0x827   : > { %1186 = vmatmul.msk.f32.vlgmr.msra.gmra.mxu2 %vm305_vm9, %v1182_v19  ;;  %1188 = vmatmul.msk.f32.vlgmr.msra.gmra.mxu3 %vm305_vm9, %v744_v25 }
 0x82d   : > { %v692_v26 = vpop.permute.xlu0 %691  ;;  %v689_v27 = vpop.permute.xlu1 %688 }
 0x82e   : > { %1183 = vmatpush.msk.msra.mxu1 %vm308_vm8, %v692_v26 }
 0x82f   : > { %1184 = vmatmul.msk.f32.vlgmr.msra.gmra.mxu1 %vm305_vm9, %v689_v27 }
 0x8aa   : > { %v740_v28 = vpop.f32.mrf.mxu2  ;;  %v768_v30 = vpop.f32.mrf.mxu3 }
 0x8ac   : > { %v714_v29 = vpop.f32.mrf.mxu1 }
 0x8ad   : > { %v741_v31 = vadd.f32 %v740_v28, %v714_v29 }
 0x8af   : > { %v771_v32 = vadd.f32 %v768_v30, %v741_v31 }
 0x8b1   : > { %v779_v34 = vadd.f32 %v777_v33, %v771_v32 }
 0x8b3   : > { %782 = vrot.lane.b32.xlu0 %v779_v34, %s1422_s17 }
 0x925   : > { %v783_v36 = vpop.permute.xlu0 %782 }
 0x926   : > { %v785_v37 = vadd.f32 %v783_v36, %v780_v35 }
 0x928   : > { %787 = vst.msk [vmem:[#allocation2] sm:$0xf] %vm786_vm12, %v785_v37 }
 0x92f   : > { %v788_v38 = vld [vmem:[#allocation2] sm:$0xf] }
 0x930   : > { %vm789_vm13 = vcmp.gt.f32.partialorder %v788_v38, 0.0  ;;  %v790_v39 = vmul.f32 0.01, %v788_v38  ;;  %v1042_v20 = vld [vmem:[#allocation2] sm:$0xf] }
 0x932   : > { %v791_v40 = vsel %vm789_vm13, %v788_v38, %v790_v39 }
 0x933   : > { %792 = vst.msk [vmem:[#allocation3] sm:$0xf] %vm786_vm12, %v791_v40 }
 0x93a   : > { %v801_v41 = vld [vmem:[#allocation3] sm:$0xf] }
 0x93b   : > { %808 = vrot.lane.b32.xlu1 %v801_v41, %s1421_s16 }
 0x943   : > { %876 = vrot.lane.b32.xlu1 %v1190_v45, %s1409_s12 }
 0x94b   : > { %821 = vrot.lane.b32.xlu1 %v1190_v45, %s1410_s13 }
 0x9ad   : > { %v809_v43 = vpop.permute.xlu1 %808 }
 0x9ae   : > { %v811_v44 = vsel %vm804_vm1, %v809_v43, 0.0 }
 0x9af   : > { %813 = vrot.lane.b32.xlu2 %v811_v44, %s1422_s17  ;;  %s1426_s17 = smov 116  }
 0x9b5   : > { %v877_v49 = vpop.permute.xlu1 %876 }
 0x9bd   : > { %v822_v51 = vpop.permute.xlu1 %821 }
 0xa09   : > { %v814_v46 = vpop.permute.xlu2 %813 }
 0xa0a   : > { %816 = vst.msk [vmem:[#allocation3] sm:$0xf] %vm786_vm12, %v814_v46 }
 0xa11   : > { %v819_v47 = vld [vmem:[#allocation3] sm:$0xf] }
 0xa12   : > { %824 = vrot.lane.b32.xlu2 %v819_v47, %s1423_s30  ;;  %878 = vrot.lane.b32.xlu0 %v819_v47, %s1424_s10  ;;  %s1427_s10 = smov 115  }
 0xa1a   : > { %909 = vperm.xlu2 %1292, %v1197_v48   ;;  %850 = vrot.lane.b32.xlu0 %v819_v47, %s1421_s16 }
 0xa6c   : > { %v825_v50 = vpop.permute.xlu2 %824 }
 0xa6d   : > { %1191 = vmatpush.msk.msrb.mxu0 %vm308_vm8, %v825_v50 }
 0xa6e   : > { %1192 = vmatmul.msk.f32.vlgmr.msrb.gmra.mxu0 %vm305_vm9, %v822_v51 }
 0xa74   : > { %v910_v59 = vpop.permute.xlu2 %909 }
 0xa84   : > { %v879_v52 = vpop.permute.xlu0 %878 }
 0xa85   : > { %1195 = vmatpush.msk.msrb.mxu2 %vm308_vm8, %v879_v52 }
 0xa86   : > { %1196 = vmatmul.msk.f32.vlgmr.msrb.gmra.mxu2 %vm305_vm9, %v877_v49 }
 0xa8c   : > { %v851_v53 = vpop.permute.xlu0 %850 }
 0xa8d   : > { %1193 = vmatpush.msk.msrb.mxu1 %vm308_vm8, %v851_v53 }
 0xa8e   : > { %1194 = vmatmul.msk.f32.vlgmr.msrb.gmra.mxu1 %vm305_vm9, %v1190_v45 }
 0xaeb   : > { %v847_v54 = vpop.f32.mrf.mxu0 }
 0xb09   : > { %v901_v57 = vpop.f32.mrf.mxu2 }
 0xb0b   : > { %v873_v55 = vpop.f32.mrf.mxu1 }
 0xb0c   : > { %v874_v56 = vadd.f32 %v873_v55, %v847_v54 }
 0xb0e   : > { %v904_v58 = vadd.f32 %v901_v57, %v874_v56 }
 0xb10   : > { %v912_v60 = vadd.f32 %v910_v59, %v904_v58 }
 0xb12   : > { %vm913_vm2 = vcmp.gt.f32.partialorder %v912_v60, 0.0  ;;  %v914_v61 = vmul.f32 0.01, %v912_v60 }
 0xb14   : > { %v915_v62 = vsel %vm913_vm2, %v912_v60, %v914_v61 }
 0xb15   : > { %917 = vrot.lane.b32.xlu0 %v915_v62, %s1425_s14 }
 0xb87   : > { %v918_v63 = vpop.permute.xlu0 %917 }
 0xb88   : > { %921 = vst.msk [vmem:[#allocation3] sm:$0xf] %vm920_vm3, %v918_v63 }
 0xb8f   : > { %v930_v0 = vld [vmem:[#allocation3] sm:$0xf] }
 0xb90   : > { %937 = vrot.lane.b32.xlu1 %v930_v0, %s1423_s30 }
 0xb98   : > { %950 = vrot.lane.b32.xlu1 %v1198_v4, %s1410_s13 }
 0xba0   : > { %1005 = vrot.lane.b32.xlu1 %v1198_v4, %s1409_s12  ;;  %s1207_s12 = sshll.u32 %s1398_s21, 2 }
 0xba1   : > { %s1068_s9 = scalar_lea.hbm %s1712_s5, %s1207_s12 }
 0xba2   : > { %s1072_s15 = sshll.u32 %s1068_s9, 4  ;;  %s1073_s15 = int_to_ptr.hbm [resolvable:$true] %s1072_s15 }
 0xba3   : > { %s1338_s16 = sshra.s32 %s1073_s15, 4  ;;  %s1339_s16 = int_to_ptr.hbm [resolvable:$true] %s1338_s16 }
 0xba4   : > { %s1340_s24 = scalar_lea.hbm %s1339_s16, 4  ;;  %p1345_p7 = scmp.lt.s32.totalorder %s1339_s16, %s1712_s5 }
 0xba5   : > { %p1341_p4 = scmp.ne.s32.totalorder %s1339_s16, %s1340_s24  ;;  %p1346_p8 = scmp.lt.s32.totalorder %s1344_s29, %s1340_s24 }
 0xba7   : > { %p1342_p5 = pnand %p1341_p4, %p1509_p9  ;;  %p1347_p10 = por %p1346_p8, %p1345_p7 }
 0xba9   : > { %p1343_p6 = pneg %p1342_p5 }
 0xbab   : > { %p1348_p13 = pnand %p1347_p10, %p1343_p6 }
 0xc02   : > { %v938_v2 = vpop.permute.xlu1 %937 }
 0xc03   : > { %v940_v3 = vsel %vm933_vm6, %v938_v2, 0.0 }
 0xc04   : > { %942 = vrot.lane.b32.xlu2 %v940_v3, %s1425_s14  ;;  %s1070_s14 = sshll.u32 %s258_s11, 4  ;;  %s1071_s14 = int_to_ptr.vmem [resolvable:$true] %s1070_s14 }
 0xc0a   : > { %v951_v9 = vpop.permute.xlu1 %950 }
 0xc12   : > { %v1006_v11 = vpop.permute.xlu1 %1005 }
 0xc5e   : > { %v943_v6 = vpop.permute.xlu2 %942 }
 0xc5f   : > { %945 = vst.msk [vmem:[#allocation3] sm:$0xf] %vm920_vm3, %v943_v6 }
 0xc66   : > { %v948_v7 = vld [vmem:[#allocation3] sm:$0xf] }
 0xc67   : > { %979 = vrot.lane.b32.xlu2 %v948_v7, %s1423_s30  ;;  %953 = vrot.lane.b32.xlu0 %v948_v7, %s1426_s17 }
 0xc6f   : > { %1038 = vperm.xlu2 %1292, %v1205_v5   ;;  %1007 = vrot.lane.b32.xlu0 %v948_v7, %s1427_s10 }
 0xcc1   : > { %v980_v8 = vpop.permute.xlu2 %979 }
 0xcc2   : > { %1201 = vmatpush.msk.msra.mxu0 %vm308_vm8, %v980_v8 }
 0xcc3   : > { %1202 = vmatmul.msk.f32.vlgmr.msra.gmra.mxu0 %vm305_vm9, %v1198_v4 }
 0xcc9   : > { %v1039_v18 = vpop.permute.xlu2 %1038 }
 0xcd9   : > { %v954_v10 = vpop.permute.xlu0 %953 }
 0xcda   : > { %1199 = vmatpush.msk.msrb.mxu3 %vm308_vm8, %v954_v10 }
 0xcdb   : > { %1200 = vmatmul.msk.f32.vlgmr.msrb.gmra.mxu3 %vm305_vm9, %v951_v9 }
 0xce1   : > { %v1008_v12 = vpop.permute.xlu0 %1007 }
 0xce2   : > { %1203 = vmatpush.msk.msra.mxu1 %vm308_vm8, %v1008_v12  ;;  %vm1054_vm8 = vcmask 125952  }
 0xce3   : > { %1204 = vmatmul.msk.f32.vlgmr.msra.gmra.mxu1 %vm305_vm9, %v1006_v11 }
 0xd40   : > { %v1002_v13 = vpop.f32.mrf.mxu0 }
 0xd5e   : > { %v976_v14 = vpop.f32.mrf.mxu3 }
 0xd5f   : > { %v1003_v15 = vadd.f32 %v1002_v13, %v976_v14 }
 0xd60   : > { %v1030_v16 = vpop.f32.mrf.mxu1 }
 0xd61   : > { %v1033_v17 = vadd.f32 %v1030_v16, %v1003_v15 }
 0xd63   : > { %v1041_v19 = vadd.f32 %v1039_v18, %v1033_v17 }
 0xd65   : > { %1044 = vrot.lane.b32.xlu0 %v1041_v19, %s1408_s28  ;;  %s1057_s28 = scalar_lea.sflag [#allocation6], %s1532_s25 }
 0xdd7   : > { %v1045_v21 = vpop.permute.xlu0 %1044 }
 0xdd8   : > { %v1047_v22 = vadd.f32 %v1045_v21, %v1042_v20 }
 0xdda   : > { %1048 = vst.msk [vmem:[#allocation2] sm:$0xf] %vm269_vm0, %v1047_v22 }
 0xde1   : > { %v1049_v23 = vld [vmem:[#allocation2] sm:$0xf] }
 0xde2   : > { %1051 = vrot.lane.b32.xlu1 %v1049_v23, %s1426_s17 }
 0xe54   : > { %v1052_v24 = vpop.permute.xlu1 %1051 }
 0xe55   : > { %1055 = vst.msk [vmem:[%s258_s11] sm:$0xf] %vm1054_vm8, %v1052_v24 }
 0xe56   : > { %1351 = shalt.err (!%p1348_p13)
}
 0xe57   : > { %1212 = dma.vmem_to_hbm [thread:$0]  (%p1509_p9), %s1071_s14, 64, %s1073_s15, %s1057_s28  }
 0xe58 PF: > { %s1084_s25 = sand.u32 1, %s1386_s18   ;;  %p1219_p0 = pnand %p1156_p12, %p1516_p11 }
 0xe59   : > { %s1085_s12 = scalar_lea.sflag [#allocation6], %s1084_s25 }
 0xe5a   : > { %p1220_p1 = pneg %p1219_p0 }
 0xe5c   : > { %1381 = dma.done.wait (%p1220_p1), %s1085_s12, 64  }
 0xe5d   : > { %1383 = vsyncadd (%p1220_p1), %s1085_s12, 4294967232  ;;  %s21_s23 = sadd.s32 1, %s1406_s23   ;;  %s1717_s18 = smov %s1390_s19 }
 0xe5e   : > { %p18_p2 = scmp.ge.s32.totalorder %s21_s23, 4   ;;  %s1718_s19 = smov %s1394_s20 }
 0xe5f   : > { %s1719_s20 = smov %s1514_s7  ;;  %s1720_s21 = smov %s1402_s22 }
 0xe60   : > { %s1721_s22 = smov %s1723_s26  ;;  %20 = sbr.rel (!%p18_p2) target bundleno = 6 (0x6), region = 117 }
 0xe65   :  { %1091 = vsyncpa [#allocation5], 1 }
 0xe66   :  { %1093 = vsyncpa [#allocation5 + $0x1], 1 }
 0xe67   :  { %1094 = vsyncpa [#allocation6], 1 }
 0xe68   :  { %1096 = vsyncpa [#allocation6 + $0x1], 1 }

</bundles_post_ra>
